<compile_context>
chip_gen: v7x
topology: tpu7x:2x2x1
jax: 0.10.0
libtpu: 0.0.40
codegen_flags: <defaults>
</compile_context>

<pallas_src>
import functools
import math

import jax
import jax.numpy as jnp
from jax.experimental import pallas as pl
from jax.experimental.pallas import tpu as pltpu


# ------------------------------ in-kernel helpers ------------------------------
def _layernorm(h, g, b, eps):
    mu = jnp.mean(h, axis=-1, keepdims=True)
    var = jnp.mean((h - mu) ** 2, axis=-1, keepdims=True)
    return (h - mu) * jax.lax.rsqrt(var + eps) * g + b


def _mm(a, w_bf16):
    # bf16 MXU operands, f32 accumulation.
    return jnp.dot(a.astype(jnp.bfloat16), w_bf16, preferred_element_type=jnp.float32)


# ------------------------------ fused model kernel ------------------------------
def fused_transformer_kernel(
    x_ref, pe_ref,                                   # (B*S,in_dim) f32, (B*S,D) f32
    emb_w_ref, emb_b_ref,                            # (in_dim,D) bf16, (1,D) f32
    qkv_w_ref, qkv_b_ref,                            # (L,D,3D) bf16, (L,1,3D) f32
    o_w_ref, o_b_ref,                                # (L,D,D) bf16, (L,1,D) f32
    ff1_w_ref, ff1_b_ref, ff2_w_ref, ff2_b_ref,      # (L,D,F) bf16,(L,1,F),(L,F,D) bf16,(L,1,D)
    ln1_g_ref, ln1_b_ref, ln2_g_ref, ln2_b_ref,      # (L,1,D) f32
    dec1_w_ref, dec1_b_ref, dec2_w_ref, dec2_b_ref,  # (D,D/2) bf16,(1,D/2),(D/2,out) bf16,(1,out)
    out_ref,                                         # (B,out) f32
    *, batch, seq, d_model, nhead, num_layers, eps):
    B, S, D, H = batch, seq, d_model, nhead
    dh = D // H
    scale = 1.0 / math.sqrt(dh)

    # ---- input embedding + positional encoding (batch folded into M = B*S) ----
    h = _mm(x_ref[...], emb_w_ref[...]) + emb_b_ref[...] + pe_ref[...]   # (B*S, D) f32

    # ---- post-norm TransformerEncoder layers, activations stay on-chip ----
    for li in range(num_layers):
        # one packed projection for Q,K,V of all heads: (B*S,D) x (D,3D)
        qkv = _mm(h, qkv_w_ref[li]) + qkv_b_ref[li]                       # (B*S, 3D)

        ctx_rows = []
        for b in range(B):
            blk = qkv[b * S:(b + 1) * S, :]                               # (S, 3D) static slice
            scores, v_heads = [], []
            for hh in range(H):
                c = hh * dh
                qh = blk[:, c:c + dh] * scale                             # (S, dh)
                kh = blk[:, D + c:D + c + dh]
                v_heads.append(blk[:, 2 * D + c:2 * D + c + dh])
                scores.append(jnp.dot(qh.astype(jnp.bfloat16),
                                      kh.T.astype(jnp.bfloat16),
                                      preferred_element_type=jnp.float32))  # (S, S)
            # batched softmax across heads: one pass over (H*S, S)
            s = jnp.concatenate(scores, axis=0)
            s = s - jnp.max(s, axis=-1, keepdims=True)
            p = jnp.exp(s)
            p = p * pl.reciprocal(jnp.sum(p, axis=-1, keepdims=True), approx=True)
            # per-head context, lane-concatenated back into (S, D)
            ctx_rows.append(jnp.concatenate(
                [jnp.dot(p[hh * S:(hh + 1) * S, :].astype(jnp.bfloat16),
                         v_heads[hh].astype(jnp.bfloat16),
                         preferred_element_type=jnp.float32)
                 for hh in range(H)], axis=-1))
        ctx = jnp.concatenate(ctx_rows, axis=0)                           # (B*S, D)

        # single full-width output projection (K = D) + residual + LayerNorm
        attn = _mm(ctx, o_w_ref[li]) + o_b_ref[li]
        h = _layernorm(h + attn, ln1_g_ref[li], ln1_b_ref[li], eps)

        # feed-forward, bias + ReLU fused into matmul epilogues
        ff = jnp.maximum(_mm(h, ff1_w_ref[li]) + ff1_b_ref[li], 0.0)
        ff = _mm(ff, ff2_w_ref[li]) + ff2_b_ref[li]
        h = _layernorm(h + ff, ln2_g_ref[li], ln2_b_ref[li], eps)

    # ---- decoder head on the last timestep of every batch element ----
    last = jnp.concatenate(
        [h[b * S + S - 1:b * S + S, :] for b in range(B)], axis=0)        # (B, D)
    dec = jnp.maximum(_mm(last, dec1_w_ref[...]) + dec1_b_ref[...], 0.0)
    out_ref[...] = _mm(dec, dec2_w_ref[...]) + dec2_b_ref[...]


# ------------------------------- forward wrapper -------------------------------
def transformer_encoder_forward(x, params, *, nhead, eps=1e-5):
    B, S, input_dim = x.shape
    D = params["emb_w"].shape[1]
    L = params["ff1_w"].shape[0]
    out_dim = params["dec2_w"].shape[1]

    x2d = x.reshape(B * S, input_dim)                       # fold batch into M
    pe = jnp.tile(params["pe"][:S, :], (B, 1))              # (B*S, D), lane-dense add

    inputs = (
        x2d, pe,
        params["emb_w"], params["emb_b"],
        params["qkv_w"], params["qkv_b"],
        params["o_w"], params["o_b"],
        params["ff1_w"], params["ff1_b"], params["ff2_w"], params["ff2_b"],
        params["ln1_g"], params["ln1_b"], params["ln2_g"], params["ln2_b"],
        params["dec1_w"], params["dec1_b"], params["dec2_w"], params["dec2_b"],
    )

    kernel = functools.partial(
        fused_transformer_kernel,
        batch=B, seq=S, d_model=D, nhead=nhead, num_layers=L, eps=eps)

    # grid=() -> single invocation: whole arrays resident in VMEM, weights fetched
    # once and single-buffered (no pipeline), all layers fused (no HBM round trips).
    out = pl.pallas_call(
        kernel,
        out_shape=jax.ShapeDtypeStruct((B, out_dim), jnp.float32),
        compiler_params=pltpu.CompilerParams(vmem_limit_bytes=32 * 1024 * 1024),
    )(*inputs)
    return out


# ------------------------------- parameter setup -------------------------------
def make_positional_encoding(max_len, d_model):
    position = jnp.arange(max_len, dtype=jnp.float32)[:, None]
    div_term = jnp.exp(
        jnp.arange(0, d_model, 2, dtype=jnp.float32) * (-math.log(10000.0) / d_model))
    pe = jnp.zeros((max_len, d_model), dtype=jnp.float32)
    pe = pe.at[:, 0::2].set(jnp.sin(position * div_term))
    pe = pe.at[:, 1::2].set(jnp.cos(position * div_term))
    return pe


def init_params(key, input_dim, d_model, nhead, num_layers, dim_ff, output_dim, max_len):
    def dense(k, fan_in, fan_out):
        kw, kb = jax.random.split(k)
        w = jax.random.normal(kw, (fan_in, fan_out), jnp.float32) * 0.05
        b = jax.random.normal(kb, (fan_out,), jnp.float32) * 0.01
        return w, b

    keys = jax.random.split(key, 3 + num_layers)
    p = {}
    w, b = dense(keys[0], input_dim, d_model)
    p["emb_w"], p["emb_b"] = w.astype(jnp.bfloat16), b.reshape(1, d_model)
    p["pe"] = make_positional_encoding(max_len, d_model)
    w, b = dense(keys[1], d_model, d_model // 2)
    p["dec1_w"], p["dec1_b"] = w.astype(jnp.bfloat16), b.reshape(1, -1)
    w, b = dense(keys[2], d_model // 2, output_dim)
    p["dec2_w"], p["dec2_b"] = w.astype(jnp.bfloat16), b.reshape(1, -1)

    qkv_w, qkv_b, o_w, o_b = [], [], [], []
    f1w, f1b, f2w, f2b = [], [], [], []
    l1g, l1b, l2g, l2b = [], [], [], []
    for li in range(num_layers):
        lk = jax.random.split(keys[3 + li], 4)
        in_w, in_b = dense(lk[0], d_model, 3 * d_model)     # packed [q | k | v], lane-dense
        out_w, out_b = dense(lk[1], d_model, d_model)       # full-width out projection
        w1, b1 = dense(lk[2], d_model, dim_ff)
        w2, b2 = dense(lk[3], dim_ff, d_model)
        qkv_w.append(in_w); qkv_b.append(in_b.reshape(1, -1))
        o_w.append(out_w); o_b.append(out_b.reshape(1, -1))
        f1w.append(w1); f1b.append(b1.reshape(1, -1))
        f2w.append(w2); f2b.append(b2.reshape(1, -1))
        l1g.append(jnp.ones((1, d_model), jnp.float32))
        l1b.append(jnp.zeros((1, d_model), jnp.float32))
        l2g.append(jnp.ones((1, d_model), jnp.float32))
        l2b.append(jnp.zeros((1, d_model), jnp.float32))

    p["qkv_w"] = jnp.stack(qkv_w).astype(jnp.bfloat16)      # (L, D, 3D) bf16
    p["qkv_b"] = jnp.stack(qkv_b)                            # (L, 1, 3D) f32
    p["o_w"] = jnp.stack(o_w).astype(jnp.bfloat16)           # (L, D, D) bf16
    p["o_b"] = jnp.stack(o_b)
    p["ff1_w"] = jnp.stack(f1w).astype(jnp.bfloat16); p["ff1_b"] = jnp.stack(f1b)
    p["ff2_w"] = jnp.stack(f2w).astype(jnp.bfloat16); p["ff2_b"] = jnp.stack(f2b)
    p["ln1_g"] = jnp.stack(l1g); p["ln1_b"] = jnp.stack(l1b)
    p["ln2_g"] = jnp.stack(l2g); p["ln2_b"] = jnp.stack(l2b)
    return p


# ------------------------------------ main ------------------------------------
if __name__ == "__main__":
    # small shapes consistent with the module's forward
    B, S = 2, 8
    input_dim, d_model, nhead, num_layers = 4, 32, 4, 2
    dim_feedforward, output_dim = 64, 3
    max_len = 64

    key = jax.random.PRNGKey(0)
    kx, kp = jax.random.split(key)
    x = jax.random.normal(kx, (B, S, input_dim), jnp.float32)
    params = init_params(kp, input_dim, d_model, nhead, num_layers,
                         dim_feedforward, output_dim, max_len)

    fwd = jax.jit(functools.partial(transformer_encoder_forward, nhead=nhead))
    out = fwd(x, params)
    jax.block_until_ready(out)
    assert out.shape == (B, output_dim), out.shape
    assert bool(jnp.all(jnp.isfinite(out)))
    print("KERNEL_OK")
</pallas_src>

<mosaic_0001>
module attributes {stable_mosaic.version = 11 : i64} {
  func.func @fused_transformer_kernel(%arg0: memref<16x4xf32, #tpu.memory_space<vmem>>, %arg1: memref<16x32xf32, #tpu.memory_space<vmem>>, %arg2: memref<4x32xbf16, #tpu.memory_space<vmem>>, %arg3: memref<1x32xf32, #tpu.memory_space<vmem>>, %arg4: memref<2x32x96xbf16, #tpu.memory_space<vmem>>, %arg5: memref<2x1x96xf32, #tpu.memory_space<vmem>>, %arg6: memref<2x32x32xbf16, #tpu.memory_space<vmem>>, %arg7: memref<2x1x32xf32, #tpu.memory_space<vmem>>, %arg8: memref<2x32x64xbf16, #tpu.memory_space<vmem>>, %arg9: memref<2x1x64xf32, #tpu.memory_space<vmem>>, %arg10: memref<2x64x32xbf16, #tpu.memory_space<vmem>>, %arg11: memref<2x1x32xf32, #tpu.memory_space<vmem>>, %arg12: memref<2x1x32xf32, #tpu.memory_space<vmem>>, %arg13: memref<2x1x32xf32, #tpu.memory_space<vmem>>, %arg14: memref<2x1x32xf32, #tpu.memory_space<vmem>>, %arg15: memref<2x1x32xf32, #tpu.memory_space<vmem>>, %arg16: memref<32x16xbf16, #tpu.memory_space<vmem>>, %arg17: memref<1x16xf32, #tpu.memory_space<vmem>>, %arg18: memref<16x3xbf16, #tpu.memory_space<vmem>>, %arg19: memref<1x3xf32, #tpu.memory_space<vmem>>, %arg20: memref<2x3xf32, #tpu.memory_space<vmem>>) attributes {dimension_semantics = [], scalar_prefetch = 0 : i64, scratch_operands = 0 : i64, tpu.core_type = #tpu.core_type<tc>} {
    %c0 = arith.constant 0 : index
    %c0_0 = arith.constant 0 : index
    %0 = vector.load %arg0[%c0, %c0_0] : memref<16x4xf32, #tpu.memory_space<vmem>>, vector<16x4xf32>
    %c0_1 = arith.constant 0 : index
    %c0_2 = arith.constant 0 : index
    %1 = vector.load %arg2[%c0_1, %c0_2] : memref<4x32xbf16, #tpu.memory_space<vmem>>, vector<4x32xbf16>
    %2 = arith.truncf %0 : vector<16x4xf32> to vector<16x4xbf16>
    %cst = arith.constant dense<0.000000e+00> : vector<16x32xf32>
    %3 = tpu.matmul %2, %1, %cst {dimension_numbers = #tpu.dot_dimension_numbers<[1], [0], [0], [1], [0, 0, 1, 1], [], []>} : vector<16x4xbf16>, vector<4x32xbf16>, vector<16x32xf32> -> vector<16x32xf32>
    %c0_3 = arith.constant 0 : index
    %c0_4 = arith.constant 0 : index
    %4 = vector.load %arg3[%c0_3, %c0_4] : memref<1x32xf32, #tpu.memory_space<vmem>>, vector<1x32xf32>
    %5 = vector.broadcast %4 : vector<1x32xf32> to vector<16x32xf32>
    %6 = arith.addf %3, %5 : vector<16x32xf32>
    %c0_5 = arith.constant 0 : index
    %c0_6 = arith.constant 0 : index
    %7 = vector.load %arg1[%c0_5, %c0_6] : memref<16x32xf32, #tpu.memory_space<vmem>>, vector<16x32xf32>
    %8 = arith.addf %6, %7 : vector<16x32xf32>
    %c0_7 = arith.constant 0 : index
    %c0_8 = arith.constant 0 : index
    %c0_9 = arith.constant 0 : index
    %9 = vector.load %arg4[%c0_7, %c0_8, %c0_9] : memref<2x32x96xbf16, #tpu.memory_space<vmem>>, vector<1x32x96xbf16>
    %10 = vector.shape_cast %9 : vector<1x32x96xbf16> to vector<32x96xbf16>
    %11 = arith.truncf %8 : vector<16x32xf32> to vector<16x32xbf16>
    %cst_10 = arith.constant dense<0.000000e+00> : vector<16x96xf32>
    %12 = tpu.matmul %11, %10, %cst_10 {dimension_numbers = #tpu.dot_dimension_numbers<[1], [0], [0], [1], [0, 0, 1, 1], [], []>} : vector<16x32xbf16>, vector<32x96xbf16>, vector<16x96xf32> -> vector<16x96xf32>
    %c0_11 = arith.constant 0 : index
    %c0_12 = arith.constant 0 : index
    %c0_13 = arith.constant 0 : index
    %13 = vector.load %arg5[%c0_11, %c0_12, %c0_13] : memref<2x1x96xf32, #tpu.memory_space<vmem>>, vector<1x1x96xf32>
    %14 = vector.shape_cast %13 : vector<1x1x96xf32> to vector<1x96xf32>
    %15 = vector.broadcast %14 : vector<1x96xf32> to vector<16x96xf32>
    %16 = arith.addf %12, %15 : vector<16x96xf32>
    %17 = vector.extract_strided_slice %16 {offsets = [0, 0], sizes = [8, 96], strides = [1, 1]} : vector<16x96xf32> to vector<8x96xf32>
    %18 = vector.extract_strided_slice %17 {offsets = [0, 0], sizes = [8, 8], strides = [1, 1]} : vector<8x96xf32> to vector<8x8xf32>
    %cst_14 = arith.constant 0.353553385 : f32
    %19 = vector.broadcast %cst_14 : f32 to vector<8x8xf32>
    %20 = arith.mulf %18, %19 : vector<8x8xf32>
    %21 = vector.extract_strided_slice %17 {offsets = [0, 32], sizes = [8, 8], strides = [1, 1]} : vector<8x96xf32> to vector<8x8xf32>
    %22 = vector.extract_strided_slice %17 {offsets = [0, 64], sizes = [8, 8], strides = [1, 1]} : vector<8x96xf32> to vector<8x8xf32>
    %23 = arith.truncf %20 : vector<8x8xf32> to vector<8x8xbf16>
    %24 = tpu.transpose %21, [1, 0] : vector<8x8xf32> -> vector<8x8xf32>
    %25 = arith.truncf %24 : vector<8x8xf32> to vector<8x8xbf16>
    %cst_15 = arith.constant dense<0.000000e+00> : vector<8x8xf32>
    %26 = tpu.matmul %23, %25, %cst_15 {dimension_numbers = #tpu.dot_dimension_numbers<[1], [0], [0], [1], [0, 0, 1, 1], [], []>} : vector<8x8xbf16>, vector<8x8xbf16>, vector<8x8xf32> -> vector<8x8xf32>
    %27 = vector.extract_strided_slice %17 {offsets = [0, 8], sizes = [8, 8], strides = [1, 1]} : vector<8x96xf32> to vector<8x8xf32>
    %cst_16 = arith.constant 0.353553385 : f32
    %28 = vector.broadcast %cst_16 : f32 to vector<8x8xf32>
    %29 = arith.mulf %27, %28 : vector<8x8xf32>
    %30 = vector.extract_strided_slice %17 {offsets = [0, 40], sizes = [8, 8], strides = [1, 1]} : vector<8x96xf32> to vector<8x8xf32>
    %31 = vector.extract_strided_slice %17 {offsets = [0, 72], sizes = [8, 8], strides = [1, 1]} : vector<8x96xf32> to vector<8x8xf32>
    %32 = arith.truncf %29 : vector<8x8xf32> to vector<8x8xbf16>
    %33 = tpu.transpose %30, [1, 0] : vector<8x8xf32> -> vector<8x8xf32>
    %34 = arith.truncf %33 : vector<8x8xf32> to vector<8x8xbf16>
    %cst_17 = arith.constant dense<0.000000e+00> : vector<8x8xf32>
    %35 = tpu.matmul %32, %34, %cst_17 {dimension_numbers = #tpu.dot_dimension_numbers<[1], [0], [0], [1], [0, 0, 1, 1], [], []>} : vector<8x8xbf16>, vector<8x8xbf16>, vector<8x8xf32> -> vector<8x8xf32>
    %36 = vector.extract_strided_slice %17 {offsets = [0, 16], sizes = [8, 8], strides = [1, 1]} : vector<8x96xf32> to vector<8x8xf32>
    %cst_18 = arith.constant 0.353553385 : f32
    %37 = vector.broadcast %cst_18 : f32 to vector<8x8xf32>
    %38 = arith.mulf %36, %37 : vector<8x8xf32>
    %39 = vector.extract_strided_slice %17 {offsets = [0, 48], sizes = [8, 8], strides = [1, 1]} : vector<8x96xf32> to vector<8x8xf32>
    %40 = vector.extract_strided_slice %17 {offsets = [0, 80], sizes = [8, 8], strides = [1, 1]} : vector<8x96xf32> to vector<8x8xf32>
    %41 = arith.truncf %38 : vector<8x8xf32> to vector<8x8xbf16>
    %42 = tpu.transpose %39, [1, 0] : vector<8x8xf32> -> vector<8x8xf32>
    %43 = arith.truncf %42 : vector<8x8xf32> to vector<8x8xbf16>
    %cst_19 = arith.constant dense<0.000000e+00> : vector<8x8xf32>
    %44 = tpu.matmul %41, %43, %cst_19 {dimension_numbers = #tpu.dot_dimension_numbers<[1], [0], [0], [1], [0, 0, 1, 1], [], []>} : vector<8x8xbf16>, vector<8x8xbf16>, vector<8x8xf32> -> vector<8x8xf32>
    %45 = vector.extract_strided_slice %17 {offsets = [0, 24], sizes = [8, 8], strides = [1, 1]} : vector<8x96xf32> to vector<8x8xf32>
    %cst_20 = arith.constant 0.353553385 : f32
    %46 = vector.broadcast %cst_20 : f32 to vector<8x8xf32>
    %47 = arith.mulf %45, %46 : vector<8x8xf32>
    %48 = vector.extract_strided_slice %17 {offsets = [0, 56], sizes = [8, 8], strides = [1, 1]} : vector<8x96xf32> to vector<8x8xf32>
    %49 = vector.extract_strided_slice %17 {offsets = [0, 88], sizes = [8, 8], strides = [1, 1]} : vector<8x96xf32> to vector<8x8xf32>
    %50 = arith.truncf %47 : vector<8x8xf32> to vector<8x8xbf16>
    %51 = tpu.transpose %48, [1, 0] : vector<8x8xf32> -> vector<8x8xf32>
    %52 = arith.truncf %51 : vector<8x8xf32> to vector<8x8xbf16>
    %cst_21 = arith.constant dense<0.000000e+00> : vector<8x8xf32>
    %53 = tpu.matmul %50, %52, %cst_21 {dimension_numbers = #tpu.dot_dimension_numbers<[1], [0], [0], [1], [0, 0, 1, 1], [], []>} : vector<8x8xbf16>, vector<8x8xbf16>, vector<8x8xf32> -> vector<8x8xf32>
    %54 = tpu.concatenate %26, %35, %44, %53 in 0 : vector<8x8xf32>, vector<8x8xf32>, vector<8x8xf32>, vector<8x8xf32> -> vector<32x8xf32>
    %cst_22 = arith.constant dense<0xFF800000> : vector<32xf32>
    %55 = vector.multi_reduction <maximumf>, %54, %cst_22 [1] : vector<32x8xf32> to vector<32xf32>
    %56 = vector.shape_cast %55 : vector<32xf32> to vector<32x1xf32>
    %57 = vector.broadcast %56 : vector<32x1xf32> to vector<32x8xf32>
    %58 = arith.subf %54, %57 : vector<32x8xf32>
    %59 = math.exp %58 : vector<32x8xf32>
    %cst_23 = arith.constant dense<0.000000e+00> : vector<32xf32>
    %60 = vector.multi_reduction <add>, %59, %cst_23 [1] : vector<32x8xf32> to vector<32xf32>
    %61 = vector.shape_cast %60 : vector<32xf32> to vector<32x1xf32>
    %62 = tpu.reciprocal %61 {approx = true} : vector<32x1xf32> -> vector<32x1xf32>
    %63 = vector.broadcast %62 : vector<32x1xf32> to vector<32x8xf32>
    %64 = arith.mulf %59, %63 : vector<32x8xf32>
    %65 = vector.extract_strided_slice %64 {offsets = [0, 0], sizes = [8, 8], strides = [1, 1]} : vector<32x8xf32> to vector<8x8xf32>
    %66 = arith.truncf %65 : vector<8x8xf32> to vector<8x8xbf16>
    %67 = arith.truncf %22 : vector<8x8xf32> to vector<8x8xbf16>
    %cst_24 = arith.constant dense<0.000000e+00> : vector<8x8xf32>
    %68 = tpu.matmul %66, %67, %cst_24 {dimension_numbers = #tpu.dot_dimension_numbers<[1], [0], [0], [1], [0, 0, 1, 1], [], []>} : vector<8x8xbf16>, vector<8x8xbf16>, vector<8x8xf32> -> vector<8x8xf32>
    %69 = vector.extract_strided_slice %64 {offsets = [8, 0], sizes = [8, 8], strides = [1, 1]} : vector<32x8xf32> to vector<8x8xf32>
    %70 = arith.truncf %69 : vector<8x8xf32> to vector<8x8xbf16>
    %71 = arith.truncf %31 : vector<8x8xf32> to vector<8x8xbf16>
    %cst_25 = arith.constant dense<0.000000e+00> : vector<8x8xf32>
    %72 = tpu.matmul %70, %71, %cst_25 {dimension_numbers = #tpu.dot_dimension_numbers<[1], [0], [0], [1], [0, 0, 1, 1], [], []>} : vector<8x8xbf16>, vector<8x8xbf16>, vector<8x8xf32> -> vector<8x8xf32>
    %73 = vector.extract_strided_slice %64 {offsets = [16, 0], sizes = [8, 8], strides = [1, 1]} : vector<32x8xf32> to vector<8x8xf32>
    %74 = arith.truncf %73 : vector<8x8xf32> to vector<8x8xbf16>
    %75 = arith.truncf %40 : vector<8x8xf32> to vector<8x8xbf16>
    %cst_26 = arith.constant dense<0.000000e+00> : vector<8x8xf32>
    %76 = tpu.matmul %74, %75, %cst_26 {dimension_numbers = #tpu.dot_dimension_numbers<[1], [0], [0], [1], [0, 0, 1, 1], [], []>} : vector<8x8xbf16>, vector<8x8xbf16>, vector<8x8xf32> -> vector<8x8xf32>
    %77 = vector.extract_strided_slice %64 {offsets = [24, 0], sizes = [8, 8], strides = [1, 1]} : vector<32x8xf32> to vector<8x8xf32>
    %78 = arith.truncf %77 : vector<8x8xf32> to vector<8x8xbf16>
    %79 = arith.truncf %49 : vector<8x8xf32> to vector<8x8xbf16>
    %cst_27 = arith.constant dense<0.000000e+00> : vector<8x8xf32>
    %80 = tpu.matmul %78, %79, %cst_27 {dimension_numbers = #tpu.dot_dimension_numbers<[1], [0], [0], [1], [0, 0, 1, 1], [], []>} : vector<8x8xbf16>, vector<8x8xbf16>, vector<8x8xf32> -> vector<8x8xf32>
    %81 = tpu.concatenate %68, %72, %76, %80 in 1 : vector<8x8xf32>, vector<8x8xf32>, vector<8x8xf32>, vector<8x8xf32> -> vector<8x32xf32>
    %82 = vector.extract_strided_slice %16 {offsets = [8, 0], sizes = [8, 96], strides = [1, 1]} : vector<16x96xf32> to vector<8x96xf32>
    %83 = vector.extract_strided_slice %82 {offsets = [0, 0], sizes = [8, 8], strides = [1, 1]} : vector<8x96xf32> to vector<8x8xf32>
    %cst_28 = arith.constant 0.353553385 : f32
    %84 = vector.broadcast %cst_28 : f32 to vector<8x8xf32>
    %85 = arith.mulf %83, %84 : vector<8x8xf32>
    %86 = vector.extract_strided_slice %82 {offsets = [0, 32], sizes = [8, 8], strides = [1, 1]} : vector<8x96xf32> to vector<8x8xf32>
    %87 = vector.extract_strided_slice %82 {offsets = [0, 64], sizes = [8, 8], strides = [1, 1]} : vector<8x96xf32> to vector<8x8xf32>
    %88 = arith.truncf %85 : vector<8x8xf32> to vector<8x8xbf16>
    %89 = tpu.transpose %86, [1, 0] : vector<8x8xf32> -> vector<8x8xf32>
    %90 = arith.truncf %89 : vector<8x8xf32> to vector<8x8xbf16>
    %cst_29 = arith.constant dense<0.000000e+00> : vector<8x8xf32>
    %91 = tpu.matmul %88, %90, %cst_29 {dimension_numbers = #tpu.dot_dimension_numbers<[1], [0], [0], [1], [0, 0, 1, 1], [], []>} : vector<8x8xbf16>, vector<8x8xbf16>, vector<8x8xf32> -> vector<8x8xf32>
    %92 = vector.extract_strided_slice %82 {offsets = [0, 8], sizes = [8, 8], strides = [1, 1]} : vector<8x96xf32> to vector<8x8xf32>
    %cst_30 = arith.constant 0.353553385 : f32
    %93 = vector.broadcast %cst_30 : f32 to vector<8x8xf32>
    %94 = arith.mulf %92, %93 : vector<8x8xf32>
    %95 = vector.extract_strided_slice %82 {offsets = [0, 40], sizes = [8, 8], strides = [1, 1]} : vector<8x96xf32> to vector<8x8xf32>
    %96 = vector.extract_strided_slice %82 {offsets = [0, 72], sizes = [8, 8], strides = [1, 1]} : vector<8x96xf32> to vector<8x8xf32>
    %97 = arith.truncf %94 : vector<8x8xf32> to vector<8x8xbf16>
    %98 = tpu.transpose %95, [1, 0] : vector<8x8xf32> -> vector<8x8xf32>
    %99 = arith.truncf %98 : vector<8x8xf32> to vector<8x8xbf16>
    %cst_31 = arith.constant dense<0.000000e+00> : vector<8x8xf32>
    %100 = tpu.matmul %97, %99, %cst_31 {dimension_numbers = #tpu.dot_dimension_numbers<[1], [0], [0], [1], [0, 0, 1, 1], [], []>} : vector<8x8xbf16>, vector<8x8xbf16>, vector<8x8xf32> -> vector<8x8xf32>
    %101 = vector.extract_strided_slice %82 {offsets = [0, 16], sizes = [8, 8], strides = [1, 1]} : vector<8x96xf32> to vector<8x8xf32>
    %cst_32 = arith.constant 0.353553385 : f32
    %102 = vector.broadcast %cst_32 : f32 to vector<8x8xf32>
    %103 = arith.mulf %101, %102 : vector<8x8xf32>
    %104 = vector.extract_strided_slice %82 {offsets = [0, 48], sizes = [8, 8], strides = [1, 1]} : vector<8x96xf32> to vector<8x8xf32>
    %105 = vector.extract_strided_slice %82 {offsets = [0, 80], sizes = [8, 8], strides = [1, 1]} : vector<8x96xf32> to vector<8x8xf32>
    %106 = arith.truncf %103 : vector<8x8xf32> to vector<8x8xbf16>
    %107 = tpu.transpose %104, [1, 0] : vector<8x8xf32> -> vector<8x8xf32>
    %108 = arith.truncf %107 : vector<8x8xf32> to vector<8x8xbf16>
    %cst_33 = arith.constant dense<0.000000e+00> : vector<8x8xf32>
    %109 = tpu.matmul %106, %108, %cst_33 {dimension_numbers = #tpu.dot_dimension_numbers<[1], [0], [0], [1], [0, 0, 1, 1], [], []>} : vector<8x8xbf16>, vector<8x8xbf16>, vector<8x8xf32> -> vector<8x8xf32>
    %110 = vector.extract_strided_slice %82 {offsets = [0, 24], sizes = [8, 8], strides = [1, 1]} : vector<8x96xf32> to vector<8x8xf32>
    %cst_34 = arith.constant 0.353553385 : f32
    %111 = vector.broadcast %cst_34 : f32 to vector<8x8xf32>
    %112 = arith.mulf %110, %111 : vector<8x8xf32>
    %113 = vector.extract_strided_slice %82 {offsets = [0, 56], sizes = [8, 8], strides = [1, 1]} : vector<8x96xf32> to vector<8x8xf32>
    %114 = vector.extract_strided_slice %82 {offsets = [0, 88], sizes = [8, 8], strides = [1, 1]} : vector<8x96xf32> to vector<8x8xf32>
    %115 = arith.truncf %112 : vector<8x8xf32> to vector<8x8xbf16>
    %116 = tpu.transpose %113, [1, 0] : vector<8x8xf32> -> vector<8x8xf32>
    %117 = arith.truncf %116 : vector<8x8xf32> to vector<8x8xbf16>
    %cst_35 = arith.constant dense<0.000000e+00> : vector<8x8xf32>
    %118 = tpu.matmul %115, %117, %cst_35 {dimension_numbers = #tpu.dot_dimension_numbers<[1], [0], [0], [1], [0, 0, 1, 1], [], []>} : vector<8x8xbf16>, vector<8x8xbf16>, vector<8x8xf32> -> vector<8x8xf32>
    %119 = tpu.concatenate %91, %100, %109, %118 in 0 : vector<8x8xf32>, vector<8x8xf32>, vector<8x8xf32>, vector<8x8xf32> -> vector<32x8xf32>
    %cst_36 = arith.constant dense<0xFF800000> : vector<32xf32>
    %120 = vector.multi_reduction <maximumf>, %119, %cst_36 [1] : vector<32x8xf32> to vector<32xf32>
    %121 = vector.shape_cast %120 : vector<32xf32> to vector<32x1xf32>
    %122 = vector.broadcast %121 : vector<32x1xf32> to vector<32x8xf32>
    %123 = arith.subf %119, %122 : vector<32x8xf32>
    %124 = math.exp %123 : vector<32x8xf32>
    %cst_37 = arith.constant dense<0.000000e+00> : vector<32xf32>
    %125 = vector.multi_reduction <add>, %124, %cst_37 [1] : vector<32x8xf32> to vector<32xf32>
    %126 = vector.shape_cast %125 : vector<32xf32> to vector<32x1xf32>
    %127 = tpu.reciprocal %126 {approx = true} : vector<32x1xf32> -> vector<32x1xf32>
    %128 = vector.broadcast %127 : vector<32x1xf32> to vector<32x8xf32>
    %129 = arith.mulf %124, %128 : vector<32x8xf32>
    %130 = vector.extract_strided_slice %129 {offsets = [0, 0], sizes = [8, 8], strides = [1, 1]} : vector<32x8xf32> to vector<8x8xf32>
    %131 = arith.truncf %130 : vector<8x8xf32> to vector<8x8xbf16>
    %132 = arith.truncf %87 : vector<8x8xf32> to vector<8x8xbf16>
    %cst_38 = arith.constant dense<0.000000e+00> : vector<8x8xf32>
    %133 = tpu.matmul %131, %132, %cst_38 {dimension_numbers = #tpu.dot_dimension_numbers<[1], [0], [0], [1], [0, 0, 1, 1], [], []>} : vector<8x8xbf16>, vector<8x8xbf16>, vector<8x8xf32> -> vector<8x8xf32>
    %134 = vector.extract_strided_slice %129 {offsets = [8, 0], sizes = [8, 8], strides = [1, 1]} : vector<32x8xf32> to vector<8x8xf32>
    %135 = arith.truncf %134 : vector<8x8xf32> to vector<8x8xbf16>
    %136 = arith.truncf %96 : vector<8x8xf32> to vector<8x8xbf16>
    %cst_39 = arith.constant dense<0.000000e+00> : vector<8x8xf32>
    %137 = tpu.matmul %135, %136, %cst_39 {dimension_numbers = #tpu.dot_dimension_numbers<[1], [0], [0], [1], [0, 0, 1, 1], [], []>} : vector<8x8xbf16>, vector<8x8xbf16>, vector<8x8xf32> -> vector<8x8xf32>
    %138 = vector.extract_strided_slice %129 {offsets = [16, 0], sizes = [8, 8], strides = [1, 1]} : vector<32x8xf32> to vector<8x8xf32>
    %139 = arith.truncf %138 : vector<8x8xf32> to vector<8x8xbf16>
    %140 = arith.truncf %105 : vector<8x8xf32> to vector<8x8xbf16>
    %cst_40 = arith.constant dense<0.000000e+00> : vector<8x8xf32>
    %141 = tpu.matmul %139, %140, %cst_40 {dimension_numbers = #tpu.dot_dimension_numbers<[1], [0], [0], [1], [0, 0, 1, 1], [], []>} : vector<8x8xbf16>, vector<8x8xbf16>, vector<8x8xf32> -> vector<8x8xf32>
    %142 = vector.extract_strided_slice %129 {offsets = [24, 0], sizes = [8, 8], strides = [1, 1]} : vector<32x8xf32> to vector<8x8xf32>
    %143 = arith.truncf %142 : vector<8x8xf32> to vector<8x8xbf16>
    %144 = arith.truncf %114 : vector<8x8xf32> to vector<8x8xbf16>
    %cst_41 = arith.constant dense<0.000000e+00> : vector<8x8xf32>
    %145 = tpu.matmul %143, %144, %cst_41 {dimension_numbers = #tpu.dot_dimension_numbers<[1], [0], [0], [1], [0, 0, 1, 1], [], []>} : vector<8x8xbf16>, vector<8x8xbf16>, vector<8x8xf32> -> vector<8x8xf32>
    %146 = tpu.concatenate %133, %137, %141, %145 in 1 : vector<8x8xf32>, vector<8x8xf32>, vector<8x8xf32>, vector<8x8xf32> -> vector<8x32xf32>
    %147 = tpu.concatenate %81, %146 in 0 : vector<8x32xf32>, vector<8x32xf32> -> vector<16x32xf32>
    %c0_42 = arith.constant 0 : index
    %c0_43 = arith.constant 0 : index
    %c0_44 = arith.constant 0 : index
    %148 = vector.load %arg6[%c0_42, %c0_43, %c0_44] : memref<2x32x32xbf16, #tpu.memory_space<vmem>>, vector<1x32x32xbf16>
    %149 = vector.shape_cast %148 : vector<1x32x32xbf16> to vector<32x32xbf16>
    %150 = arith.truncf %147 : vector<16x32xf32> to vector<16x32xbf16>
    %cst_45 = arith.constant dense<0.000000e+00> : vector<16x32xf32>
    %151 = tpu.matmul %150, %149, %cst_45 {dimension_numbers = #tpu.dot_dimension_numbers<[1], [0], [0], [1], [0, 0, 1, 1], [], []>} : vector<16x32xbf16>, vector<32x32xbf16>, vector<16x32xf32> -> vector<16x32xf32>
    %c0_46 = arith.constant 0 : index
    %c0_47 = arith.constant 0 : index
    %c0_48 = arith.constant 0 : index
    %152 = vector.load %arg7[%c0_46, %c0_47, %c0_48] : memref<2x1x32xf32, #tpu.memory_space<vmem>>, vector<1x1x32xf32>
    %153 = vector.shape_cast %152 : vector<1x1x32xf32> to vector<1x32xf32>
    %154 = vector.broadcast %153 : vector<1x32xf32> to vector<16x32xf32>
    %155 = arith.addf %151, %154 : vector<16x32xf32>
    %156 = arith.addf %8, %155 : vector<16x32xf32>
    %c0_49 = arith.constant 0 : index
    %c0_50 = arith.constant 0 : index
    %c0_51 = arith.constant 0 : index
    %157 = vector.load %arg12[%c0_49, %c0_50, %c0_51] : memref<2x1x32xf32, #tpu.memory_space<vmem>>, vector<1x1x32xf32>
    %158 = vector.shape_cast %157 : vector<1x1x32xf32> to vector<1x32xf32>
    %c0_52 = arith.constant 0 : index
    %c0_53 = arith.constant 0 : index
    %c0_54 = arith.constant 0 : index
    %159 = vector.load %arg13[%c0_52, %c0_53, %c0_54] : memref<2x1x32xf32, #tpu.memory_space<vmem>>, vector<1x1x32xf32>
    %160 = vector.shape_cast %159 : vector<1x1x32xf32> to vector<1x32xf32>
    %cst_55 = arith.constant dense<0.000000e+00> : vector<16xf32>
    %161 = vector.multi_reduction <add>, %156, %cst_55 [1] : vector<16x32xf32> to vector<16xf32>
    %162 = vector.shape_cast %161 : vector<16xf32> to vector<16x1xf32>
    %cst_56 = arith.constant 3.200000e+01 : f32
    %163 = vector.broadcast %cst_56 : f32 to vector<16x1xf32>
    %164 = arith.divf %162, %163 : vector<16x1xf32>
    %165 = vector.broadcast %164 : vector<16x1xf32> to vector<16x32xf32>
    %166 = arith.subf %156, %165 : vector<16x32xf32>
    %167 = arith.mulf %166, %166 : vector<16x32xf32>
    %cst_57 = arith.constant dense<0.000000e+00> : vector<16xf32>
    %168 = vector.multi_reduction <add>, %167, %cst_57 [1] : vector<16x32xf32> to vector<16xf32>
    %169 = vector.shape_cast %168 : vector<16xf32> to vector<16x1xf32>
    %cst_58 = arith.constant 3.200000e+01 : f32
    %170 = vector.broadcast %cst_58 : f32 to vector<16x1xf32>
    %171 = arith.divf %169, %170 : vector<16x1xf32>
    %172 = vector.broadcast %164 : vector<16x1xf32> to vector<16x32xf32>
    %173 = arith.subf %156, %172 : vector<16x32xf32>
    %cst_59 = arith.constant 9.99999974E-6 : f32
    %174 = vector.broadcast %cst_59 : f32 to vector<16x1xf32>
    %175 = arith.addf %171, %174 : vector<16x1xf32>
    %176 = math.rsqrt %175 : vector<16x1xf32>
    %177 = vector.broadcast %176 : vector<16x1xf32> to vector<16x32xf32>
    %178 = arith.mulf %173, %177 : vector<16x32xf32>
    %179 = vector.broadcast %158 : vector<1x32xf32> to vector<16x32xf32>
    %180 = arith.mulf %178, %179 : vector<16x32xf32>
    %181 = vector.broadcast %160 : vector<1x32xf32> to vector<16x32xf32>
    %182 = arith.addf %180, %181 : vector<16x32xf32>
    %c0_60 = arith.constant 0 : index
    %c0_61 = arith.constant 0 : index
    %c0_62 = arith.constant 0 : index
    %183 = vector.load %arg8[%c0_60, %c0_61, %c0_62] : memref<2x32x64xbf16, #tpu.memory_space<vmem>>, vector<1x32x64xbf16>
    %184 = vector.shape_cast %183 : vector<1x32x64xbf16> to vector<32x64xbf16>
    %185 = arith.truncf %182 : vector<16x32xf32> to vector<16x32xbf16>
    %cst_63 = arith.constant dense<0.000000e+00> : vector<16x64xf32>
    %186 = tpu.matmul %185, %184, %cst_63 {dimension_numbers = #tpu.dot_dimension_numbers<[1], [0], [0], [1], [0, 0, 1, 1], [], []>} : vector<16x32xbf16>, vector<32x64xbf16>, vector<16x64xf32> -> vector<16x64xf32>
    %c0_64 = arith.constant 0 : index
    %c0_65 = arith.constant 0 : index
    %c0_66 = arith.constant 0 : index
    %187 = vector.load %arg9[%c0_64, %c0_65, %c0_66] : memref<2x1x64xf32, #tpu.memory_space<vmem>>, vector<1x1x64xf32>
    %188 = vector.shape_cast %187 : vector<1x1x64xf32> to vector<1x64xf32>
    %189 = vector.broadcast %188 : vector<1x64xf32> to vector<16x64xf32>
    %190 = arith.addf %186, %189 : vector<16x64xf32>
    %cst_67 = arith.constant 0.000000e+00 : f32
    %191 = vector.broadcast %cst_67 : f32 to vector<16x64xf32>
    %192 = arith.maximumf %190, %191 : vector<16x64xf32>
    %c0_68 = arith.constant 0 : index
    %c0_69 = arith.constant 0 : index
    %c0_70 = arith.constant 0 : index
    %193 = vector.load %arg10[%c0_68, %c0_69, %c0_70] : memref<2x64x32xbf16, #tpu.memory_space<vmem>>, vector<1x64x32xbf16>
    %194 = vector.shape_cast %193 : vector<1x64x32xbf16> to vector<64x32xbf16>
    %195 = arith.truncf %192 : vector<16x64xf32> to vector<16x64xbf16>
    %cst_71 = arith.constant dense<0.000000e+00> : vector<16x32xf32>
    %196 = tpu.matmul %195, %194, %cst_71 {dimension_numbers = #tpu.dot_dimension_numbers<[1], [0], [0], [1], [0, 0, 1, 1], [], []>} : vector<16x64xbf16>, vector<64x32xbf16>, vector<16x32xf32> -> vector<16x32xf32>
    %c0_72 = arith.constant 0 : index
    %c0_73 = arith.constant 0 : index
    %c0_74 = arith.constant 0 : index
    %197 = vector.load %arg11[%c0_72, %c0_73, %c0_74] : memref<2x1x32xf32, #tpu.memory_space<vmem>>, vector<1x1x32xf32>
    %198 = vector.shape_cast %197 : vector<1x1x32xf32> to vector<1x32xf32>
    %199 = vector.broadcast %198 : vector<1x32xf32> to vector<16x32xf32>
    %200 = arith.addf %196, %199 : vector<16x32xf32>
    %201 = arith.addf %182, %200 : vector<16x32xf32>
    %c0_75 = arith.constant 0 : index
    %c0_76 = arith.constant 0 : index
    %c0_77 = arith.constant 0 : index
    %202 = vector.load %arg14[%c0_75, %c0_76, %c0_77] : memref<2x1x32xf32, #tpu.memory_space<vmem>>, vector<1x1x32xf32>
    %203 = vector.shape_cast %202 : vector<1x1x32xf32> to vector<1x32xf32>
    %c0_78 = arith.constant 0 : index
    %c0_79 = arith.constant 0 : index
    %c0_80 = arith.constant 0 : index
    %204 = vector.load %arg15[%c0_78, %c0_79, %c0_80] : memref<2x1x32xf32, #tpu.memory_space<vmem>>, vector<1x1x32xf32>
    %205 = vector.shape_cast %204 : vector<1x1x32xf32> to vector<1x32xf32>
    %cst_81 = arith.constant dense<0.000000e+00> : vector<16xf32>
    %206 = vector.multi_reduction <add>, %201, %cst_81 [1] : vector<16x32xf32> to vector<16xf32>
    %207 = vector.shape_cast %206 : vector<16xf32> to vector<16x1xf32>
    %cst_82 = arith.constant 3.200000e+01 : f32
    %208 = vector.broadcast %cst_82 : f32 to vector<16x1xf32>
    %209 = arith.divf %207, %208 : vector<16x1xf32>
    %210 = vector.broadcast %209 : vector<16x1xf32> to vector<16x32xf32>
    %211 = arith.subf %201, %210 : vector<16x32xf32>
    %212 = arith.mulf %211, %211 : vector<16x32xf32>
    %cst_83 = arith.constant dense<0.000000e+00> : vector<16xf32>
    %213 = vector.multi_reduction <add>, %212, %cst_83 [1] : vector<16x32xf32> to vector<16xf32>
    %214 = vector.shape_cast %213 : vector<16xf32> to vector<16x1xf32>
    %cst_84 = arith.constant 3.200000e+01 : f32
    %215 = vector.broadcast %cst_84 : f32 to vector<16x1xf32>
    %216 = arith.divf %214, %215 : vector<16x1xf32>
    %217 = vector.broadcast %209 : vector<16x1xf32> to vector<16x32xf32>
    %218 = arith.subf %201, %217 : vector<16x32xf32>
    %cst_85 = arith.constant 9.99999974E-6 : f32
    %219 = vector.broadcast %cst_85 : f32 to vector<16x1xf32>
    %220 = arith.addf %216, %219 : vector<16x1xf32>
    %221 = math.rsqrt %220 : vector<16x1xf32>
    %222 = vector.broadcast %221 : vector<16x1xf32> to vector<16x32xf32>
    %223 = arith.mulf %218, %222 : vector<16x32xf32>
    %224 = vector.broadcast %203 : vector<1x32xf32> to vector<16x32xf32>
    %225 = arith.mulf %223, %224 : vector<16x32xf32>
    %226 = vector.broadcast %205 : vector<1x32xf32> to vector<16x32xf32>
    %227 = arith.addf %225, %226 : vector<16x32xf32>
    %c1 = arith.constant 1 : index
    %c0_86 = arith.constant 0 : index
    %c0_87 = arith.constant 0 : index
    %228 = vector.load %arg4[%c1, %c0_86, %c0_87] : memref<2x32x96xbf16, #tpu.memory_space<vmem>>, vector<1x32x96xbf16>
    %229 = vector.shape_cast %228 : vector<1x32x96xbf16> to vector<32x96xbf16>
    %230 = arith.truncf %227 : vector<16x32xf32> to vector<16x32xbf16>
    %cst_88 = arith.constant dense<0.000000e+00> : vector<16x96xf32>
    %231 = tpu.matmul %230, %229, %cst_88 {dimension_numbers = #tpu.dot_dimension_numbers<[1], [0], [0], [1], [0, 0, 1, 1], [], []>} : vector<16x32xbf16>, vector<32x96xbf16>, vector<16x96xf32> -> vector<16x96xf32>
    %c1_89 = arith.constant 1 : index
    %c0_90 = arith.constant 0 : index
    %c0_91 = arith.constant 0 : index
    %232 = vector.load %arg5[%c1_89, %c0_90, %c0_91] : memref<2x1x96xf32, #tpu.memory_space<vmem>>, vector<1x1x96xf32>
    %233 = vector.shape_cast %232 : vector<1x1x96xf32> to vector<1x96xf32>
    %234 = vector.broadcast %233 : vector<1x96xf32> to vector<16x96xf32>
    %235 = arith.addf %231, %234 : vector<16x96xf32>
    %236 = vector.extract_strided_slice %235 {offsets = [0, 0], sizes = [8, 96], strides = [1, 1]} : vector<16x96xf32> to vector<8x96xf32>
    %237 = vector.extract_strided_slice %236 {offsets = [0, 0], sizes = [8, 8], strides = [1, 1]} : vector<8x96xf32> to vector<8x8xf32>
    %cst_92 = arith.constant 0.353553385 : f32
    %238 = vector.broadcast %cst_92 : f32 to vector<8x8xf32>
    %239 = arith.mulf %237, %238 : vector<8x8xf32>
    %240 = vector.extract_strided_slice %236 {offsets = [0, 32], sizes = [8, 8], strides = [1, 1]} : vector<8x96xf32> to vector<8x8xf32>
    %241 = vector.extract_strided_slice %236 {offsets = [0, 64], sizes = [8, 8], strides = [1, 1]} : vector<8x96xf32> to vector<8x8xf32>
    %242 = arith.truncf %239 : vector<8x8xf32> to vector<8x8xbf16>
    %243 = tpu.transpose %240, [1, 0] : vector<8x8xf32> -> vector<8x8xf32>
    %244 = arith.truncf %243 : vector<8x8xf32> to vector<8x8xbf16>
    %cst_93 = arith.constant dense<0.000000e+00> : vector<8x8xf32>
    %245 = tpu.matmul %242, %244, %cst_93 {dimension_numbers = #tpu.dot_dimension_numbers<[1], [0], [0], [1], [0, 0, 1, 1], [], []>} : vector<8x8xbf16>, vector<8x8xbf16>, vector<8x8xf32> -> vector<8x8xf32>
    %246 = vector.extract_strided_slice %236 {offsets = [0, 8], sizes = [8, 8], strides = [1, 1]} : vector<8x96xf32> to vector<8x8xf32>
    %cst_94 = arith.constant 0.353553385 : f32
    %247 = vector.broadcast %cst_94 : f32 to vector<8x8xf32>
    %248 = arith.mulf %246, %247 : vector<8x8xf32>
    %249 = vector.extract_strided_slice %236 {offsets = [0, 40], sizes = [8, 8], strides = [1, 1]} : vector<8x96xf32> to vector<8x8xf32>
    %250 = vector.extract_strided_slice %236 {offsets = [0, 72], sizes = [8, 8], strides = [1, 1]} : vector<8x96xf32> to vector<8x8xf32>
    %251 = arith.truncf %248 : vector<8x8xf32> to vector<8x8xbf16>
    %252 = tpu.transpose %249, [1, 0] : vector<8x8xf32> -> vector<8x8xf32>
    %253 = arith.truncf %252 : vector<8x8xf32> to vector<8x8xbf16>
    %cst_95 = arith.constant dense<0.000000e+00> : vector<8x8xf32>
    %254 = tpu.matmul %251, %253, %cst_95 {dimension_numbers = #tpu.dot_dimension_numbers<[1], [0], [0], [1], [0, 0, 1, 1], [], []>} : vector<8x8xbf16>, vector<8x8xbf16>, vector<8x8xf32> -> vector<8x8xf32>
    %255 = vector.extract_strided_slice %236 {offsets = [0, 16], sizes = [8, 8], strides = [1, 1]} : vector<8x96xf32> to vector<8x8xf32>
    %cst_96 = arith.constant 0.353553385 : f32
    %256 = vector.broadcast %cst_96 : f32 to vector<8x8xf32>
    %257 = arith.mulf %255, %256 : vector<8x8xf32>
    %258 = vector.extract_strided_slice %236 {offsets = [0, 48], sizes = [8, 8], strides = [1, 1]} : vector<8x96xf32> to vector<8x8xf32>
    %259 = vector.extract_strided_slice %236 {offsets = [0, 80], sizes = [8, 8], strides = [1, 1]} : vector<8x96xf32> to vector<8x8xf32>
    %260 = arith.truncf %257 : vector<8x8xf32> to vector<8x8xbf16>
    %261 = tpu.transpose %258, [1, 0] : vector<8x8xf32> -> vector<8x8xf32>
    %262 = arith.truncf %261 : vector<8x8xf32> to vector<8x8xbf16>
    %cst_97 = arith.constant dense<0.000000e+00> : vector<8x8xf32>
    %263 = tpu.matmul %260, %262, %cst_97 {dimension_numbers = #tpu.dot_dimension_numbers<[1], [0], [0], [1], [0, 0, 1, 1], [], []>} : vector<8x8xbf16>, vector<8x8xbf16>, vector<8x8xf32> -> vector<8x8xf32>
    %264 = vector.extract_strided_slice %236 {offsets = [0, 24], sizes = [8, 8], strides = [1, 1]} : vector<8x96xf32> to vector<8x8xf32>
    %cst_98 = arith.constant 0.353553385 : f32
    %265 = vector.broadcast %cst_98 : f32 to vector<8x8xf32>
    %266 = arith.mulf %264, %265 : vector<8x8xf32>
    %267 = vector.extract_strided_slice %236 {offsets = [0, 56], sizes = [8, 8], strides = [1, 1]} : vector<8x96xf32> to vector<8x8xf32>
    %268 = vector.extract_strided_slice %236 {offsets = [0, 88], sizes = [8, 8], strides = [1, 1]} : vector<8x96xf32> to vector<8x8xf32>
    %269 = arith.truncf %266 : vector<8x8xf32> to vector<8x8xbf16>
    %270 = tpu.transpose %267, [1, 0] : vector<8x8xf32> -> vector<8x8xf32>
    %271 = arith.truncf %270 : vector<8x8xf32> to vector<8x8xbf16>
    %cst_99 = arith.constant dense<0.000000e+00> : vector<8x8xf32>
    %272 = tpu.matmul %269, %271, %cst_99 {dimension_numbers = #tpu.dot_dimension_numbers<[1], [0], [0], [1], [0, 0, 1, 1], [], []>} : vector<8x8xbf16>, vector<8x8xbf16>, vector<8x8xf32> -> vector<8x8xf32>
    %273 = tpu.concatenate %245, %254, %263, %272 in 0 : vector<8x8xf32>, vector<8x8xf32>, vector<8x8xf32>, vector<8x8xf32> -> vector<32x8xf32>
    %cst_100 = arith.constant dense<0xFF800000> : vector<32xf32>
    %274 = vector.multi_reduction <maximumf>, %273, %cst_100 [1] : vector<32x8xf32> to vector<32xf32>
    %275 = vector.shape_cast %274 : vector<32xf32> to vector<32x1xf32>
    %276 = vector.broadcast %275 : vector<32x1xf32> to vector<32x8xf32>
    %277 = arith.subf %273, %276 : vector<32x8xf32>
    %278 = math.exp %277 : vector<32x8xf32>
    %cst_101 = arith.constant dense<0.000000e+00> : vector<32xf32>
    %279 = vector.multi_reduction <add>, %278, %cst_101 [1] : vector<32x8xf32> to vector<32xf32>
    %280 = vector.shape_cast %279 : vector<32xf32> to vector<32x1xf32>
    %281 = tpu.reciprocal %280 {approx = true} : vector<32x1xf32> -> vector<32x1xf32>
    %282 = vector.broadcast %281 : vector<32x1xf32> to vector<32x8xf32>
    %283 = arith.mulf %278, %282 : vector<32x8xf32>
    %284 = vector.extract_strided_slice %283 {offsets = [0, 0], sizes = [8, 8], strides = [1, 1]} : vector<32x8xf32> to vector<8x8xf32>
    %285 = arith.truncf %284 : vector<8x8xf32> to vector<8x8xbf16>
    %286 = arith.truncf %241 : vector<8x8xf32> to vector<8x8xbf16>
    %cst_102 = arith.constant dense<0.000000e+00> : vector<8x8xf32>
    %287 = tpu.matmul %285, %286, %cst_102 {dimension_numbers = #tpu.dot_dimension_numbers<[1], [0], [0], [1], [0, 0, 1, 1], [], []>} : vector<8x8xbf16>, vector<8x8xbf16>, vector<8x8xf32> -> vector<8x8xf32>
    %288 = vector.extract_strided_slice %283 {offsets = [8, 0], sizes = [8, 8], strides = [1, 1]} : vector<32x8xf32> to vector<8x8xf32>
    %289 = arith.truncf %288 : vector<8x8xf32> to vector<8x8xbf16>
    %290 = arith.truncf %250 : vector<8x8xf32> to vector<8x8xbf16>
    %cst_103 = arith.constant dense<0.000000e+00> : vector<8x8xf32>
    %291 = tpu.matmul %289, %290, %cst_103 {dimension_numbers = #tpu.dot_dimension_numbers<[1], [0], [0], [1], [0, 0, 1, 1], [], []>} : vector<8x8xbf16>, vector<8x8xbf16>, vector<8x8xf32> -> vector<8x8xf32>
    %292 = vector.extract_strided_slice %283 {offsets = [16, 0], sizes = [8, 8], strides = [1, 1]} : vector<32x8xf32> to vector<8x8xf32>
    %293 = arith.truncf %292 : vector<8x8xf32> to vector<8x8xbf16>
    %294 = arith.truncf %259 : vector<8x8xf32> to vector<8x8xbf16>
    %cst_104 = arith.constant dense<0.000000e+00> : vector<8x8xf32>
    %295 = tpu.matmul %293, %294, %cst_104 {dimension_numbers = #tpu.dot_dimension_numbers<[1], [0], [0], [1], [0, 0, 1, 1], [], []>} : vector<8x8xbf16>, vector<8x8xbf16>, vector<8x8xf32> -> vector<8x8xf32>
    %296 = vector.extract_strided_slice %283 {offsets = [24, 0], sizes = [8, 8], strides = [1, 1]} : vector<32x8xf32> to vector<8x8xf32>
    %297 = arith.truncf %296 : vector<8x8xf32> to vector<8x8xbf16>
    %298 = arith.truncf %268 : vector<8x8xf32> to vector<8x8xbf16>
    %cst_105 = arith.constant dense<0.000000e+00> : vector<8x8xf32>
    %299 = tpu.matmul %297, %298, %cst_105 {dimension_numbers = #tpu.dot_dimension_numbers<[1], [0], [0], [1], [0, 0, 1, 1], [], []>} : vector<8x8xbf16>, vector<8x8xbf16>, vector<8x8xf32> -> vector<8x8xf32>
    %300 = tpu.concatenate %287, %291, %295, %299 in 1 : vector<8x8xf32>, vector<8x8xf32>, vector<8x8xf32>, vector<8x8xf32> -> vector<8x32xf32>
    %301 = vector.extract_strided_slice %235 {offsets = [8, 0], sizes = [8, 96], strides = [1, 1]} : vector<16x96xf32> to vector<8x96xf32>
    %302 = vector.extract_strided_slice %301 {offsets = [0, 0], sizes = [8, 8], strides = [1, 1]} : vector<8x96xf32> to vector<8x8xf32>
    %cst_106 = arith.constant 0.353553385 : f32
    %303 = vector.broadcast %cst_106 : f32 to vector<8x8xf32>
    %304 = arith.mulf %302, %303 : vector<8x8xf32>
    %305 = vector.extract_strided_slice %301 {offsets = [0, 32], sizes = [8, 8], strides = [1, 1]} : vector<8x96xf32> to vector<8x8xf32>
    %306 = vector.extract_strided_slice %301 {offsets = [0, 64], sizes = [8, 8], strides = [1, 1]} : vector<8x96xf32> to vector<8x8xf32>
    %307 = arith.truncf %304 : vector<8x8xf32> to vector<8x8xbf16>
    %308 = tpu.transpose %305, [1, 0] : vector<8x8xf32> -> vector<8x8xf32>
    %309 = arith.truncf %308 : vector<8x8xf32> to vector<8x8xbf16>
    %cst_107 = arith.constant dense<0.000000e+00> : vector<8x8xf32>
    %310 = tpu.matmul %307, %309, %cst_107 {dimension_numbers = #tpu.dot_dimension_numbers<[1], [0], [0], [1], [0, 0, 1, 1], [], []>} : vector<8x8xbf16>, vector<8x8xbf16>, vector<8x8xf32> -> vector<8x8xf32>
    %311 = vector.extract_strided_slice %301 {offsets = [0, 8], sizes = [8, 8], strides = [1, 1]} : vector<8x96xf32> to vector<8x8xf32>
    %cst_108 = arith.constant 0.353553385 : f32
    %312 = vector.broadcast %cst_108 : f32 to vector<8x8xf32>
    %313 = arith.mulf %311, %312 : vector<8x8xf32>
    %314 = vector.extract_strided_slice %301 {offsets = [0, 40], sizes = [8, 8], strides = [1, 1]} : vector<8x96xf32> to vector<8x8xf32>
    %315 = vector.extract_strided_slice %301 {offsets = [0, 72], sizes = [8, 8], strides = [1, 1]} : vector<8x96xf32> to vector<8x8xf32>
    %316 = arith.truncf %313 : vector<8x8xf32> to vector<8x8xbf16>
    %317 = tpu.transpose %314, [1, 0] : vector<8x8xf32> -> vector<8x8xf32>
    %318 = arith.truncf %317 : vector<8x8xf32> to vector<8x8xbf16>
    %cst_109 = arith.constant dense<0.000000e+00> : vector<8x8xf32>
    %319 = tpu.matmul %316, %318, %cst_109 {dimension_numbers = #tpu.dot_dimension_numbers<[1], [0], [0], [1], [0, 0, 1, 1], [], []>} : vector<8x8xbf16>, vector<8x8xbf16>, vector<8x8xf32> -> vector<8x8xf32>
    %320 = vector.extract_strided_slice %301 {offsets = [0, 16], sizes = [8, 8], strides = [1, 1]} : vector<8x96xf32> to vector<8x8xf32>
    %cst_110 = arith.constant 0.353553385 : f32
    %321 = vector.broadcast %cst_110 : f32 to vector<8x8xf32>
    %322 = arith.mulf %320, %321 : vector<8x8xf32>
    %323 = vector.extract_strided_slice %301 {offsets = [0, 48], sizes = [8, 8], strides = [1, 1]} : vector<8x96xf32> to vector<8x8xf32>
    %324 = vector.extract_strided_slice %301 {offsets = [0, 80], sizes = [8, 8], strides = [1, 1]} : vector<8x96xf32> to vector<8x8xf32>
    %325 = arith.truncf %322 : vector<8x8xf32> to vector<8x8xbf16>
    %326 = tpu.transpose %323, [1, 0] : vector<8x8xf32> -> vector<8x8xf32>
    %327 = arith.truncf %326 : vector<8x8xf32> to vector<8x8xbf16>
    %cst_111 = arith.constant dense<0.000000e+00> : vector<8x8xf32>
    %328 = tpu.matmul %325, %327, %cst_111 {dimension_numbers = #tpu.dot_dimension_numbers<[1], [0], [0], [1], [0, 0, 1, 1], [], []>} : vector<8x8xbf16>, vector<8x8xbf16>, vector<8x8xf32> -> vector<8x8xf32>
    %329 = vector.extract_strided_slice %301 {offsets = [0, 24], sizes = [8, 8], strides = [1, 1]} : vector<8x96xf32> to vector<8x8xf32>
    %cst_112 = arith.constant 0.353553385 : f32
    %330 = vector.broadcast %cst_112 : f32 to vector<8x8xf32>
    %331 = arith.mulf %329, %330 : vector<8x8xf32>
    %332 = vector.extract_strided_slice %301 {offsets = [0, 56], sizes = [8, 8], strides = [1, 1]} : vector<8x96xf32> to vector<8x8xf32>
    %333 = vector.extract_strided_slice %301 {offsets = [0, 88], sizes = [8, 8], strides = [1, 1]} : vector<8x96xf32> to vector<8x8xf32>
    %334 = arith.truncf %331 : vector<8x8xf32> to vector<8x8xbf16>
    %335 = tpu.transpose %332, [1, 0] : vector<8x8xf32> -> vector<8x8xf32>
    %336 = arith.truncf %335 : vector<8x8xf32> to vector<8x8xbf16>
    %cst_113 = arith.constant dense<0.000000e+00> : vector<8x8xf32>
    %337 = tpu.matmul %334, %336, %cst_113 {dimension_numbers = #tpu.dot_dimension_numbers<[1], [0], [0], [1], [0, 0, 1, 1], [], []>} : vector<8x8xbf16>, vector<8x8xbf16>, vector<8x8xf32> -> vector<8x8xf32>
    %338 = tpu.concatenate %310, %319, %328, %337 in 0 : vector<8x8xf32>, vector<8x8xf32>, vector<8x8xf32>, vector<8x8xf32> -> vector<32x8xf32>
    %cst_114 = arith.constant dense<0xFF800000> : vector<32xf32>
    %339 = vector.multi_reduction <maximumf>, %338, %cst_114 [1] : vector<32x8xf32> to vector<32xf32>
    %340 = vector.shape_cast %339 : vector<32xf32> to vector<32x1xf32>
    %341 = vector.broadcast %340 : vector<32x1xf32> to vector<32x8xf32>
    %342 = arith.subf %338, %341 : vector<32x8xf32>
    %343 = math.exp %342 : vector<32x8xf32>
    %cst_115 = arith.constant dense<0.000000e+00> : vector<32xf32>
    %344 = vector.multi_reduction <add>, %343, %cst_115 [1] : vector<32x8xf32> to vector<32xf32>
    %345 = vector.shape_cast %344 : vector<32xf32> to vector<32x1xf32>
    %346 = tpu.reciprocal %345 {approx = true} : vector<32x1xf32> -> vector<32x1xf32>
    %347 = vector.broadcast %346 : vector<32x1xf32> to vector<32x8xf32>
    %348 = arith.mulf %343, %347 : vector<32x8xf32>
    %349 = vector.extract_strided_slice %348 {offsets = [0, 0], sizes = [8, 8], strides = [1, 1]} : vector<32x8xf32> to vector<8x8xf32>
    %350 = arith.truncf %349 : vector<8x8xf32> to vector<8x8xbf16>
    %351 = arith.truncf %306 : vector<8x8xf32> to vector<8x8xbf16>
    %cst_116 = arith.constant dense<0.000000e+00> : vector<8x8xf32>
    %352 = tpu.matmul %350, %351, %cst_116 {dimension_numbers = #tpu.dot_dimension_numbers<[1], [0], [0], [1], [0, 0, 1, 1], [], []>} : vector<8x8xbf16>, vector<8x8xbf16>, vector<8x8xf32> -> vector<8x8xf32>
    %353 = vector.extract_strided_slice %348 {offsets = [8, 0], sizes = [8, 8], strides = [1, 1]} : vector<32x8xf32> to vector<8x8xf32>
    %354 = arith.truncf %353 : vector<8x8xf32> to vector<8x8xbf16>
    %355 = arith.truncf %315 : vector<8x8xf32> to vector<8x8xbf16>
    %cst_117 = arith.constant dense<0.000000e+00> : vector<8x8xf32>
    %356 = tpu.matmul %354, %355, %cst_117 {dimension_numbers = #tpu.dot_dimension_numbers<[1], [0], [0], [1], [0, 0, 1, 1], [], []>} : vector<8x8xbf16>, vector<8x8xbf16>, vector<8x8xf32> -> vector<8x8xf32>
    %357 = vector.extract_strided_slice %348 {offsets = [16, 0], sizes = [8, 8], strides = [1, 1]} : vector<32x8xf32> to vector<8x8xf32>
    %358 = arith.truncf %357 : vector<8x8xf32> to vector<8x8xbf16>
    %359 = arith.truncf %324 : vector<8x8xf32> to vector<8x8xbf16>
    %cst_118 = arith.constant dense<0.000000e+00> : vector<8x8xf32>
    %360 = tpu.matmul %358, %359, %cst_118 {dimension_numbers = #tpu.dot_dimension_numbers<[1], [0], [0], [1], [0, 0, 1, 1], [], []>} : vector<8x8xbf16>, vector<8x8xbf16>, vector<8x8xf32> -> vector<8x8xf32>
    %361 = vector.extract_strided_slice %348 {offsets = [24, 0], sizes = [8, 8], strides = [1, 1]} : vector<32x8xf32> to vector<8x8xf32>
    %362 = arith.truncf %361 : vector<8x8xf32> to vector<8x8xbf16>
    %363 = arith.truncf %333 : vector<8x8xf32> to vector<8x8xbf16>
    %cst_119 = arith.constant dense<0.000000e+00> : vector<8x8xf32>
    %364 = tpu.matmul %362, %363, %cst_119 {dimension_numbers = #tpu.dot_dimension_numbers<[1], [0], [0], [1], [0, 0, 1, 1], [], []>} : vector<8x8xbf16>, vector<8x8xbf16>, vector<8x8xf32> -> vector<8x8xf32>
    %365 = tpu.concatenate %352, %356, %360, %364 in 1 : vector<8x8xf32>, vector<8x8xf32>, vector<8x8xf32>, vector<8x8xf32> -> vector<8x32xf32>
    %366 = tpu.concatenate %300, %365 in 0 : vector<8x32xf32>, vector<8x32xf32> -> vector<16x32xf32>
    %c1_120 = arith.constant 1 : index
    %c0_121 = arith.constant 0 : index
    %c0_122 = arith.constant 0 : index
    %367 = vector.load %arg6[%c1_120, %c0_121, %c0_122] : memref<2x32x32xbf16, #tpu.memory_space<vmem>>, vector<1x32x32xbf16>
    %368 = vector.shape_cast %367 : vector<1x32x32xbf16> to vector<32x32xbf16>
    %369 = arith.truncf %366 : vector<16x32xf32> to vector<16x32xbf16>
    %cst_123 = arith.constant dense<0.000000e+00> : vector<16x32xf32>
    %370 = tpu.matmul %369, %368, %cst_123 {dimension_numbers = #tpu.dot_dimension_numbers<[1], [0], [0], [1], [0, 0, 1, 1], [], []>} : vector<16x32xbf16>, vector<32x32xbf16>, vector<16x32xf32> -> vector<16x32xf32>
    %c1_124 = arith.constant 1 : index
    %c0_125 = arith.constant 0 : index
    %c0_126 = arith.constant 0 : index
    %371 = vector.load %arg7[%c1_124, %c0_125, %c0_126] : memref<2x1x32xf32, #tpu.memory_space<vmem>>, vector<1x1x32xf32>
    %372 = vector.shape_cast %371 : vector<1x1x32xf32> to vector<1x32xf32>
    %373 = vector.broadcast %372 : vector<1x32xf32> to vector<16x32xf32>
    %374 = arith.addf %370, %373 : vector<16x32xf32>
    %375 = arith.addf %227, %374 : vector<16x32xf32>
    %c1_127 = arith.constant 1 : index
    %c0_128 = arith.constant 0 : index
    %c0_129 = arith.constant 0 : index
    %376 = vector.load %arg12[%c1_127, %c0_128, %c0_129] : memref<2x1x32xf32, #tpu.memory_space<vmem>>, vector<1x1x32xf32>
    %377 = vector.shape_cast %376 : vector<1x1x32xf32> to vector<1x32xf32>
    %c1_130 = arith.constant 1 : index
    %c0_131 = arith.constant 0 : index
    %c0_132 = arith.constant 0 : index
    %378 = vector.load %arg13[%c1_130, %c0_131, %c0_132] : memref<2x1x32xf32, #tpu.memory_space<vmem>>, vector<1x1x32xf32>
    %379 = vector.shape_cast %378 : vector<1x1x32xf32> to vector<1x32xf32>
    %cst_133 = arith.constant dense<0.000000e+00> : vector<16xf32>
    %380 = vector.multi_reduction <add>, %375, %cst_133 [1] : vector<16x32xf32> to vector<16xf32>
    %381 = vector.shape_cast %380 : vector<16xf32> to vector<16x1xf32>
    %cst_134 = arith.constant 3.200000e+01 : f32
    %382 = vector.broadcast %cst_134 : f32 to vector<16x1xf32>
    %383 = arith.divf %381, %382 : vector<16x1xf32>
    %384 = vector.broadcast %383 : vector<16x1xf32> to vector<16x32xf32>
    %385 = arith.subf %375, %384 : vector<16x32xf32>
    %386 = arith.mulf %385, %385 : vector<16x32xf32>
    %cst_135 = arith.constant dense<0.000000e+00> : vector<16xf32>
    %387 = vector.multi_reduction <add>, %386, %cst_135 [1] : vector<16x32xf32> to vector<16xf32>
    %388 = vector.shape_cast %387 : vector<16xf32> to vector<16x1xf32>
    %cst_136 = arith.constant 3.200000e+01 : f32
    %389 = vector.broadcast %cst_136 : f32 to vector<16x1xf32>
    %390 = arith.divf %388, %389 : vector<16x1xf32>
    %391 = vector.broadcast %383 : vector<16x1xf32> to vector<16x32xf32>
    %392 = arith.subf %375, %391 : vector<16x32xf32>
    %cst_137 = arith.constant 9.99999974E-6 : f32
    %393 = vector.broadcast %cst_137 : f32 to vector<16x1xf32>
    %394 = arith.addf %390, %393 : vector<16x1xf32>
    %395 = math.rsqrt %394 : vector<16x1xf32>
    %396 = vector.broadcast %395 : vector<16x1xf32> to vector<16x32xf32>
    %397 = arith.mulf %392, %396 : vector<16x32xf32>
    %398 = vector.broadcast %377 : vector<1x32xf32> to vector<16x32xf32>
    %399 = arith.mulf %397, %398 : vector<16x32xf32>
    %400 = vector.broadcast %379 : vector<1x32xf32> to vector<16x32xf32>
    %401 = arith.addf %399, %400 : vector<16x32xf32>
    %c1_138 = arith.constant 1 : index
    %c0_139 = arith.constant 0 : index
    %c0_140 = arith.constant 0 : index
    %402 = vector.load %arg8[%c1_138, %c0_139, %c0_140] : memref<2x32x64xbf16, #tpu.memory_space<vmem>>, vector<1x32x64xbf16>
    %403 = vector.shape_cast %402 : vector<1x32x64xbf16> to vector<32x64xbf16>
    %404 = arith.truncf %401 : vector<16x32xf32> to vector<16x32xbf16>
    %cst_141 = arith.constant dense<0.000000e+00> : vector<16x64xf32>
    %405 = tpu.matmul %404, %403, %cst_141 {dimension_numbers = #tpu.dot_dimension_numbers<[1], [0], [0], [1], [0, 0, 1, 1], [], []>} : vector<16x32xbf16>, vector<32x64xbf16>, vector<16x64xf32> -> vector<16x64xf32>
    %c1_142 = arith.constant 1 : index
    %c0_143 = arith.constant 0 : index
    %c0_144 = arith.constant 0 : index
    %406 = vector.load %arg9[%c1_142, %c0_143, %c0_144] : memref<2x1x64xf32, #tpu.memory_space<vmem>>, vector<1x1x64xf32>
    %407 = vector.shape_cast %406 : vector<1x1x64xf32> to vector<1x64xf32>
    %408 = vector.broadcast %407 : vector<1x64xf32> to vector<16x64xf32>
    %409 = arith.addf %405, %408 : vector<16x64xf32>
    %cst_145 = arith.constant 0.000000e+00 : f32
    %410 = vector.broadcast %cst_145 : f32 to vector<16x64xf32>
    %411 = arith.maximumf %409, %410 : vector<16x64xf32>
    %c1_146 = arith.constant 1 : index
    %c0_147 = arith.constant 0 : index
    %c0_148 = arith.constant 0 : index
    %412 = vector.load %arg10[%c1_146, %c0_147, %c0_148] : memref<2x64x32xbf16, #tpu.memory_space<vmem>>, vector<1x64x32xbf16>
    %413 = vector.shape_cast %412 : vector<1x64x32xbf16> to vector<64x32xbf16>
    %414 = arith.truncf %411 : vector<16x64xf32> to vector<16x64xbf16>
    %cst_149 = arith.constant dense<0.000000e+00> : vector<16x32xf32>
    %415 = tpu.matmul %414, %413, %cst_149 {dimension_numbers = #tpu.dot_dimension_numbers<[1], [0], [0], [1], [0, 0, 1, 1], [], []>} : vector<16x64xbf16>, vector<64x32xbf16>, vector<16x32xf32> -> vector<16x32xf32>
    %c1_150 = arith.constant 1 : index
    %c0_151 = arith.constant 0 : index
    %c0_152 = arith.constant 0 : index
    %416 = vector.load %arg11[%c1_150, %c0_151, %c0_152] : memref<2x1x32xf32, #tpu.memory_space<vmem>>, vector<1x1x32xf32>
    %417 = vector.shape_cast %416 : vector<1x1x32xf32> to vector<1x32xf32>
    %418 = vector.broadcast %417 : vector<1x32xf32> to vector<16x32xf32>
    %419 = arith.addf %415, %418 : vector<16x32xf32>
    %420 = arith.addf %401, %419 : vector<16x32xf32>
    %c1_153 = arith.constant 1 : index
    %c0_154 = arith.constant 0 : index
    %c0_155 = arith.constant 0 : index
    %421 = vector.load %arg14[%c1_153, %c0_154, %c0_155] : memref<2x1x32xf32, #tpu.memory_space<vmem>>, vector<1x1x32xf32>
    %422 = vector.shape_cast %421 : vector<1x1x32xf32> to vector<1x32xf32>
    %c1_156 = arith.constant 1 : index
    %c0_157 = arith.constant 0 : index
    %c0_158 = arith.constant 0 : index
    %423 = vector.load %arg15[%c1_156, %c0_157, %c0_158] : memref<2x1x32xf32, #tpu.memory_space<vmem>>, vector<1x1x32xf32>
    %424 = vector.shape_cast %423 : vector<1x1x32xf32> to vector<1x32xf32>
    %cst_159 = arith.constant dense<0.000000e+00> : vector<16xf32>
    %425 = vector.multi_reduction <add>, %420, %cst_159 [1] : vector<16x32xf32> to vector<16xf32>
    %426 = vector.shape_cast %425 : vector<16xf32> to vector<16x1xf32>
    %cst_160 = arith.constant 3.200000e+01 : f32
    %427 = vector.broadcast %cst_160 : f32 to vector<16x1xf32>
    %428 = arith.divf %426, %427 : vector<16x1xf32>
    %429 = vector.broadcast %428 : vector<16x1xf32> to vector<16x32xf32>
    %430 = arith.subf %420, %429 : vector<16x32xf32>
    %431 = arith.mulf %430, %430 : vector<16x32xf32>
    %cst_161 = arith.constant dense<0.000000e+00> : vector<16xf32>
    %432 = vector.multi_reduction <add>, %431, %cst_161 [1] : vector<16x32xf32> to vector<16xf32>
    %433 = vector.shape_cast %432 : vector<16xf32> to vector<16x1xf32>
    %cst_162 = arith.constant 3.200000e+01 : f32
    %434 = vector.broadcast %cst_162 : f32 to vector<16x1xf32>
    %435 = arith.divf %433, %434 : vector<16x1xf32>
    %436 = vector.broadcast %428 : vector<16x1xf32> to vector<16x32xf32>
    %437 = arith.subf %420, %436 : vector<16x32xf32>
    %cst_163 = arith.constant 9.99999974E-6 : f32
    %438 = vector.broadcast %cst_163 : f32 to vector<16x1xf32>
    %439 = arith.addf %435, %438 : vector<16x1xf32>
    %440 = math.rsqrt %439 : vector<16x1xf32>
    %441 = vector.broadcast %440 : vector<16x1xf32> to vector<16x32xf32>
    %442 = arith.mulf %437, %441 : vector<16x32xf32>
    %443 = vector.broadcast %422 : vector<1x32xf32> to vector<16x32xf32>
    %444 = arith.mulf %442, %443 : vector<16x32xf32>
    %445 = vector.broadcast %424 : vector<1x32xf32> to vector<16x32xf32>
    %446 = arith.addf %444, %445 : vector<16x32xf32>
    %447 = vector.extract_strided_slice %446 {offsets = [7, 0], sizes = [1, 32], strides = [1, 1]} : vector<16x32xf32> to vector<1x32xf32>
    %448 = vector.extract_strided_slice %446 {offsets = [15, 0], sizes = [1, 32], strides = [1, 1]} : vector<16x32xf32> to vector<1x32xf32>
    %449 = tpu.concatenate %447, %448 in 0 : vector<1x32xf32>, vector<1x32xf32> -> vector<2x32xf32>
    %c0_164 = arith.constant 0 : index
    %c0_165 = arith.constant 0 : index
    %450 = vector.load %arg16[%c0_164, %c0_165] : memref<32x16xbf16, #tpu.memory_space<vmem>>, vector<32x16xbf16>
    %451 = arith.truncf %449 : vector<2x32xf32> to vector<2x32xbf16>
    %cst_166 = arith.constant dense<0.000000e+00> : vector<2x16xf32>
    %452 = tpu.matmul %451, %450, %cst_166 {dimension_numbers = #tpu.dot_dimension_numbers<[1], [0], [0], [1], [0, 0, 1, 1], [], []>} : vector<2x32xbf16>, vector<32x16xbf16>, vector<2x16xf32> -> vector<2x16xf32>
    %c0_167 = arith.constant 0 : index
    %c0_168 = arith.constant 0 : index
    %453 = vector.load %arg17[%c0_167, %c0_168] : memref<1x16xf32, #tpu.memory_space<vmem>>, vector<1x16xf32>
    %454 = vector.broadcast %453 : vector<1x16xf32> to vector<2x16xf32>
    %455 = arith.addf %452, %454 : vector<2x16xf32>
    %cst_169 = arith.constant 0.000000e+00 : f32
    %456 = vector.broadcast %cst_169 : f32 to vector<2x16xf32>
    %457 = arith.maximumf %455, %456 : vector<2x16xf32>
    %c0_170 = arith.constant 0 : index
    %c0_171 = arith.constant 0 : index
    %458 = vector.load %arg18[%c0_170, %c0_171] : memref<16x3xbf16, #tpu.memory_space<vmem>>, vector<16x3xbf16>
    %459 = arith.truncf %457 : vector<2x16xf32> to vector<2x16xbf16>
    %cst_172 = arith.constant dense<0.000000e+00> : vector<2x3xf32>
    %460 = tpu.matmul %459, %458, %cst_172 {dimension_numbers = #tpu.dot_dimension_numbers<[1], [0], [0], [1], [0, 0, 1, 1], [], []>} : vector<2x16xbf16>, vector<16x3xbf16>, vector<2x3xf32> -> vector<2x3xf32>
    %c0_173 = arith.constant 0 : index
    %c0_174 = arith.constant 0 : index
    %461 = vector.load %arg19[%c0_173, %c0_174] : memref<1x3xf32, #tpu.memory_space<vmem>>, vector<1x3xf32>
    %462 = vector.broadcast %461 : vector<1x3xf32> to vector<2x3xf32>
    %463 = arith.addf %460, %462 : vector<2x3xf32>
    %c0_175 = arith.constant 0 : index
    %c0_176 = arith.constant 0 : index
    %464 = vector.load %arg20[%c0_175, %c0_176] : memref<2x3xf32, #tpu.memory_space<vmem>>, vector<2x3xf32>
    tpu.vector_store %arg20[%c0_175, %c0_176], %463 {strides = array<i32>} : memref<2x3xf32, #tpu.memory_space<vmem>>, vector<2x3xf32>,
    return
  }
}

</mosaic_0001>

<bundles_post_ra>
// kernel: transformer_encoder_forward.1
= control target key start
LH: loop header
LB: loop body
LE: loop exit
PB: predicated region body
PF: predicated region fallthrough
CT: control target
= control target key end

     0   :  { %s4860_s0 = inlined_call_operand.vmem [shape: f32[16,4], index: 0, kind: input, shape index: {}]   ;;  %s4861_s1 = inlined_call_operand.vmem [shape: f32[16,32], index: 1, kind: input, shape index: {}]   ;;  %s4862_s2 = inlined_call_operand.vmem [shape: bf16[4,32], index: 2, kind: input, shape index: {}]   ;;  %s4863_s3 = inlined_call_operand.vmem [shape: f32[1,32], index: 3, kind: input, shape index: {}]   ;;  %s4864_s4 = inlined_call_operand.vmem [shape: bf16[2,32,96], index: 4, kind: input, shape index: {}]   ;;  %s4865_s5 = inlined_call_operand.vmem [shape: f32[2,1,96], index: 5, kind: input, shape index: {}]   ;;  %s4866_s6 = inlined_call_operand.vmem [shape: bf16[2,32,32], index: 6, kind: input, shape index: {}]   ;;  %s4867_s7 = inlined_call_operand.vmem [shape: f32[2,1,32], index: 7, kind: input, shape index: {}]   ;;  %s4868_s8 = inlined_call_operand.vmem [shape: bf16[2,32,64], index: 8, kind: input, shape index: {}]   ;;  %s4869_s9 = inlined_call_operand.vmem [shape: f32[2,1,64], index: 9, kind: input, shape index: {}]   ;;  %s4870_s10 = inlined_call_operand.vmem [shape: bf16[2,64,32], index: 10, kind: input, shape index: {}]   ;;  %s4871_s11 = inlined_call_operand.vmem [shape: f32[2,1,32], index: 11, kind: input, shape index: {}]   ;;  %s4872_s12 = inlined_call_operand.vmem [shape: f32[2,1,32], index: 12, kind: input, shape index: {}]   ;;  %s4873_s13 = inlined_call_operand.vmem [shape: f32[2,1,32], index: 13, kind: input, shape index: {}]   ;;  %s4874_s14 = inlined_call_operand.vmem [shape: f32[2,1,32], index: 14, kind: input, shape index: {}]   ;;  %s4875_s15 = inlined_call_operand.vmem [shape: f32[2,1,32], index: 15, kind: input, shape index: {}]   ;;  %s4876_s16 = inlined_call_operand.vmem [shape: bf16[32,16], index: 16, kind: input, shape index: {}]   ;;  %s4877_s17 = inlined_call_operand.vmem [shape: f32[1,16], index: 17, kind: input, shape index: {}]   ;;  %s4878_s18 = inlined_call_operand.vmem [shape: bf16[16,3], index: 18, kind: input, shape index: {}]   ;;  %s4879_s19 = inlined_call_operand.vmem [shape: f32[1,3], index: 19, kind: input, shape index: {}]   ;;  %s4880_s20 = inlined_call_operand.hbm [shape: f32[2,3], index: 20, kind: output, shape index: {}]  }
   0x1   :  { %4897 = sst [smem:[#allocation5_spill]] %s4860_s0 }
   0x2   :  { %4898 = sst [smem:[#allocation6_spill]] %s4861_s1 }
   0x3   :  { %4899 = sst [smem:[#allocation7_spill]] %s4862_s2 }
   0x4   :  { %4900 = sst [smem:[#allocation8_spill]] %s4863_s3 }
   0x5   :  { %4901 = sst [smem:[#allocation9_spill]] %s4864_s4 }
   0x6   :  { %s4902_s23 = sld [smem:[#allocation7_spill]]  ;;  %vm82_vm0 = vcmask 1041408   ;;  %s4903_s25 = sld [smem:[#allocation5_spill]]  ;;  %v4171_v2 = vmov 0.0   ;;  %vm4172_vm1 = vmmov 0   ;;  %vm78_vm2 = vcmask 31744  }
   0x7   :  { %3657 = vmatprep.subr.bf16.mxu0 %v4171_v2  ;;  %3659 = vmatprep.mubr.msk.bf16.mxu0 %vm4172_vm1, %v4171_v2 }
   0x8   :  { %3663 = vmatprep.subr.bf16.mxu1 %v4171_v2  ;;  %3667 = vmatprep.mubr.msk.bf16.mxu1 %vm4172_vm1, %v4171_v2 }
   0xc   :  { %v69_v0 = vld [vmem:[%s4902_s23] sm:$0x3]  ;;  %v68_v4 = vld [vmem:[%s4903_s25 + $0x8] sm:$0xff] }
   0xd   :  { %v67_v1 = vld [vmem:[%s4903_s25] sm:$0xff]  ;;  %v84_v3 = vsel %vm82_vm0, %v69_v0, 0 }
   0xe   :  { %3658 = vmatpush3.bf16.msra.mxu0 %v84_v3  ;;  %v70_v5 = vpack.c.bf16 %v68_v4, %v67_v1 }
   0xf   :  { %3671 = vmatprep.subr.bf16.mxu0 %v4171_v2 }
  0x11   :  { %3660 = vmatmul.mubr.msk.bf16.vlgmr.msra.gmra.mrb[0].mxu0 %vm78_vm2, %v70_v5 }
  0x12   :  { %3673 = vmatprep.mubr.msk.bf16.mxu0 %vm4172_vm1, %v4171_v2 }
  0x13   :  { %25 = vsyncpa [#allocation3], 0  ;;  %s4904_s4 = sld [smem:[#allocation9_spill]]  ;;  %s4905_s1 = sld [smem:[#allocation8_spill]]  ;;  %vm155_vm3 = vcmask 261120   ;;  %vm243_vm4 = vcmask 1043456  }
  0x14   :  { %s4906_s24 = sld [smem:[#allocation6_spill]]  ;;  %v3447_v20 = vld [vmem:[%s4865_s5] ss:$0 sm:$0xff]  ;;  %s4173_s27 = smov 80   ;;  %vm239_vm5 = vcmask 64512   ;;  %vm795_vm6 = vcmask 130048  }
  0x15   :  { %s4174_s28 = smov 96   ;;  %s4175_s29 = smov 72   ;;  %vm797_vm7 = vcmask 195584   ;;  %vm1619_vm8 = vcmask 523264   ;;  %vm3300_vm9 = vcmask 1040384   ;;  %vm3429_vm10 = vcmask 17408  }
  0x16   :  { %s4176_s30 = smov 88   ;;  %s4177_s0 = smov 112  }
  0x17   :  { %s4178_s21 = smov 120   ;;  %s4893_s22 = smov 64  }
  0x18   :  { %s4884_s23 = smov 48   ;;  %s4886_s2 = smov 40  }
  0x19   :  { %v4044_v6 = vld [vmem:[%s4904_s4] sm:$0xff]   ;;  %v4045_v7 = vld [vmem:[%s4904_s4 + $0x8] sm:$0xff]   ;;  %s4889_s25 = smov 16   ;;  %s4909_s3 = smov 56  }
  0x1a   :  { %3664 = vmatpush3.bf16.msra.mxu1 %v4044_v6  ;;  %v3445_v8 = vld [vmem:[%s4905_s1] ss:$0 sm:$0xff]  ;;  %v128_v14 = vld [vmem:[%s4906_s24 + $0x8] sm:$0xff]  ;;  %s4895_s1 = smov 104   ;;  %s4910_s26 = smov 40  }
  0x1b   :  { %3665 = vmatprep.subr.bf16.mxu1 %v4171_v2  ;;  %v127_v12 = vld [vmem:[%s4906_s24] sm:$0xff]  ;;  %s4891_s24 = smov 56  }
  0x1e   :  { %3666 = vmatpush3.bf16.msra.mxu1 %v4045_v7 }
  0x1f   :  { %3677 = vmatprep.subr.bf16.mxu1 %v4171_v2 }
  0xe4   :  { %v120_v9 = vpop.f32.mrb[0].mxu0 }
  0xe5   :  { %v121_v10 = vadd.f32 %v3445_v8, %v120_v9  ;;  %v3661_v11 = vpop.f32.mrb[1].mxu0 }
  0xe6   :  { %v123_v13 = vpop.f32.mrb[2].mxu0 }
  0xe7   :  { %v124_v15 = vadd.f32 %v3445_v8, %v123_v13  ;;  %v3662_v16 = vpop.f32.mrb[3].mxu0  ;;  %v4328_v17 = vadd.f32 %v127_v12, %v121_v10 }
  0xe9   :  { %v4330_v18 = vadd.f32 %v128_v14, %v124_v15 }
  0xeb   :  { %v135_v19 = vpack.c.bf16 %v4330_v18, %v4328_v17 }
  0xed   :  { %3668 = vmatmul.mubr.msk.bf16.vlgmr.msra.gmra.mrb[0].mxu1 %vm155_vm3, %v135_v19 }
  0xee   :  { %3679 = vmatprep.mubr.msk.bf16.mxu1 %vm4172_vm1, %v4171_v2 }
 0x1c0   :  { %v193_v21 = vpop.f32.mrb[0].mxu1 }
 0x1c1   :  { %v4340_v22 = vadd.f32 %v3447_v20, %v193_v21  ;;  %v3669_v23 = vpop.f32.mrb[1].mxu1 }
 0x1c2   :  { %v196_v24 = vpop.f32.mrb[2].mxu1 }
 0x1c3   :  { %v4342_v25 = vadd.f32 %v3447_v20, %v196_v24  ;;  %372 = vrot.lane.b32.xlu1 %v4340_v22, %s4173_s27  ;;  %203 = vrot.lane.b32.xlu0 %v4340_v22, %s4174_s28  ;;  %v3670_v26 = vpop.f32.mrb[3].mxu1  ;;  %v200_v27 = vmul.f32 0.35355338, %v4340_v22  ;;  %v585_v9 = vpack.c.bf16 %v4340_v22, %v4340_v22 }
 0x1c5   :  { %v201_v28 = vpack.c.bf16 %v200_v27, %v200_v27  ;;  %v799_v10 = vmul.f32 0.35355338, %v4342_v25 }
 0x1c7   :  { %456 = vrot.lane.b32.xlu1 %v4340_v22, %s4175_s29  ;;  %287 = vrot.lane.b32.xlu0 %v4340_v22, %s4176_s30  ;;  %v4394_v11 = vpack.c.bf16 %v799_v10, %v799_v10 }
 0x1cb   :  { %408 = vrot.lane.b32.xlu1 %v201_v28, %s4177_s0  ;;  %324 = vrot.lane.b32.xlu0 %v201_v28, %s4178_s21 }
 0x1cf   :  { %492 = vrot.lane.b32.xlu0 %v201_v28, %s4895_s1 }
 0x235   :  { %v373_v29 = vpop.permute.xlu1 %372  ;;  %v204_v30 = vpop.permute.xlu0 %203 }
 0x239   :  { %v457_v31 = vpop.permute.xlu1 %456  ;;  %v288_v32 = vpop.permute.xlu0 %287 }
 0x23a   :  { %v3958_v33 = vpack.i.bf16 %v288_v32, %v204_v30  ;;  %v3965_v34 = vpack.i.bf16 %v457_v31, %v373_v29 }
 0x23c   :  { %3959 = vxpose.xlu1.b32.start.end [1/1] (short) (narrow) %v3958_v33, 8  ;;  %3966 = vxpose.xlu0.b32.start.end [1/1] (short) (narrow) %v3965_v34, 8 }
 0x23d   :  { %v325_v35 = vpop.permute.xlu0 %324  ;;  %v409_v36 = vpop.permute.xlu1 %408 }
 0x241   :  { %v493_v37 = vpop.permute.xlu0 %492 }
 0x2bc   :  { %v3960_v38 = vpop.trf.xlu1  ;;  %v3967_v39 = vpop.trf.xlu0 }
 0x2bd   :  { %v3964_v40 = vunpack.i.h.bf16 %v3960_v38  ;;  %v3961_v41 = vunpack.i.l.bf16 %v3960_v38  ;;  %v3968_v42 = vunpack.i.l.bf16 %v3967_v39  ;;  %v3971_v43 = vunpack.i.h.bf16 %v3967_v39 }
 0x2bf   :  { %v238_v44 = vpack.c.bf16 %v3961_v41, %v3961_v41  ;;  %v322_v45 = vpack.c.bf16 %v3964_v40, %v3964_v40  ;;  %v407_v46 = vpack.c.bf16 %v3968_v42, %v3968_v42  ;;  %v491_v47 = vpack.c.bf16 %v3971_v43, %v3971_v43 }
 0x2c1   :  { %v245_v48 = vsel %vm243_vm4, %v238_v44, 0  ;;  %v330_v49 = vsel %vm243_vm4, %v322_v45, 0  ;;  %v414_v50 = vsel %vm243_vm4, %v407_v46, 0  ;;  %v498_v51 = vsel %vm243_vm4, %v491_v47, 0 }
 0x2c2   :  { %3672 = vmatpush3.bf16.msra.mxu0 %v245_v48  ;;  %3678 = vmatpush3.bf16.msra.mxu1 %v330_v49 }
 0x2c3   :  { %3683 = vmatprep.subr.bf16.mxu0 %v4171_v2  ;;  %3689 = vmatprep.subr.bf16.mxu1 %v4171_v2 }
 0x2c5   :  { %3674 = vmatmul.mubr.msk.bf16.vlgmr.msra.gmra.mrb[4].mxu0 %vm239_vm5, %v201_v28  ;;  %3680 = vmatmul.mubr.msk.bf16.vlgmr.msra.gmra.mrb[4].mxu1 %vm239_vm5, %v325_v35 }
 0x2c6   :  { %3684 = vmatpush3.bf16.msra.mxu0 %v414_v50  ;;  %3690 = vmatpush3.bf16.msra.mxu1 %v498_v51 }
 0x2c7   :  { %3685 = vmatprep.mubr.msk.bf16.mxu0 %vm4172_vm1, %v4171_v2  ;;  %3691 = vmatprep.mubr.msk.bf16.mxu1 %vm4172_vm1, %v4171_v2 }
 0x2c8   :  { %3695 = vmatprep.subr.bf16.mxu0 %v4171_v2  ;;  %3701 = vmatprep.subr.bf16.mxu1 %v4171_v2 }
 0x2cd   :  { %3686 = vmatmul.mubr.msk.bf16.vlgmr.msra.gmra.mrb[8].mxu0 %vm239_vm5, %v409_v36  ;;  %3692 = vmatmul.mubr.msk.bf16.vlgmr.msra.gmra.mrb[8].mxu1 %vm239_vm5, %v493_v37 }
 0x2ce   :  { %3697 = vmatprep.mubr.msk.bf16.mxu0 %vm4172_vm1, %v4171_v2  ;;  %3703 = vmatprep.mubr.msk.bf16.mxu1 %vm4172_vm1, %v4171_v2 }
 0x398   :  { %v281_v52 = vpop.f32.mrb[4].mxu0  ;;  %v366_v53 = vpop.f32.mrb[4].mxu1 }
 0x399   :  { %v3675_v54 = vpop.f32.mrb[5].mxu0  ;;  %v3681_v55 = vpop.f32.mrb[5].mxu1  ;;  %v543_v56 = vsel %vm239_vm5, %v366_v53, -inf  ;;  %v540_v57 = vsel %vm239_vm5, %v281_v52, -inf }
 0x39a   :  { %544 = vmax.xlane.f32.xlu1 %v543_v56  ;;  %v369_v58 = vpop.f32.mrb[6].mxu1  ;;  %541 = vmax.xlane.f32.xlu0 %v540_v57  ;;  %v284_v59 = vpop.f32.mrb[6].mxu0 }
 0x39b   :  { %v3676_v60 = vpop.f32.mrb[7].mxu0  ;;  %v3682_v61 = vpop.f32.mrb[7].mxu1 }
 0x3a0   :  { %v450_v62 = vpop.f32.mrb[8].mxu0  ;;  %v534_v63 = vpop.f32.mrb[8].mxu1 }
 0x3a1   :  { %v3687_v0 = vpop.f32.mrb[9].mxu0  ;;  %v3693_v1 = vpop.f32.mrb[9].mxu1  ;;  %v549_v3 = vsel %vm239_vm5, %v534_v63, -inf  ;;  %v546_v4 = vsel %vm239_vm5, %v450_v62, -inf }
 0x3a2   :  { %550 = vmax.xlane.f32.xlu1 %v549_v3  ;;  %v537_v5 = vpop.f32.mrb[10].mxu1  ;;  %547 = vmax.xlane.f32.xlu0 %v546_v4  ;;  %v453_v6 = vpop.f32.mrb[10].mxu0 }
 0x3a3   :  { %v3688_v7 = vpop.f32.mrb[11].mxu0  ;;  %v3694_v8 = vpop.f32.mrb[11].mxu1 }
 0x3b3   :  { %884 = vrot.lane.b32.xlu1 %v4342_v25, %s4176_s30 }
 0x3b7   :  { %1053 = vrot.lane.b32.xlu1 %v4342_v25, %s4175_s29 }
 0x3b8   :  { %802 = vrot.lane.b32.xlu0 %v4342_v25, %s4174_s28 }
 0x3bb   :  { %587 = vrot.lane.b32.xlu1 %v585_v9, %s4893_s22 }
 0x3bc   :  { %969 = vrot.lane.b32.xlu0 %v4342_v25, %s4173_s27 }
 0x3bf   :  { %685 = vrot.lane.b32.xlu1 %v585_v9, %s4884_s23 }
 0x3c0   :  { %636 = vrot.lane.b32.xlu0 %v585_v9, %s4891_s24 }
 0x3c3   :  { %921 = vrot.lane.b32.xlu1 %v4394_v11, %s4178_s21 }
 0x3c4   :  { %734 = vrot.lane.b32.xlu0 %v585_v9, %s4886_s2 }
 0x427   :  { %v545_v12 = vpop.xlane.xlu1 %544  ;;  %v542_v13 = vpop.xlane.xlu0 %541 }
 0x428   :  { %v553_v14 = vsub.f32 %v366_v53, %v545_v12  ;;  %v552_v15 = vsub.f32 %v281_v52, %v542_v13 }
 0x42a   :  { %v558_v16 = vmul.f32 1.442695, %v553_v14  ;;  %v556_v19 = vmul.f32 1.442695, %v552_v15 }
 0x42c   :  { %4067 = vpow2.f32 %v558_v16 }
 0x42d   :  { %4069 = vpow2.f32 %v556_v19 }
 0x42f   :  { %v551_v20 = vpop.xlane.xlu1 %550  ;;  %v548_v21 = vpop.xlane.xlu0 %547 }
 0x430   :  { %v555_v22 = vsub.f32 %v534_v63, %v551_v20  ;;  %v554_v23 = vsub.f32 %v450_v62, %v548_v21 }
 0x432   :  { %v562_v24 = vmul.f32 1.442695, %v555_v22  ;;  %v560_v26 = vmul.f32 1.442695, %v554_v23 }
 0x433   :  { %v885_v27 = vpop.permute.xlu1 %884  ;;  %v803_v28 = vpop.permute.xlu0 %802 }
 0x434   :  { %4071 = vpow2.f32 %v562_v24  ;;  %v3972_v44 = vpack.i.bf16 %v885_v27, %v803_v28 }
 0x435   :  { %4073 = vpow2.f32 %v560_v26 }
 0x436   :  { %v4068_v29 = vpop.eup %4067 }
 0x437   :  { %v4070_v30 = vpop.eup %4069  ;;  %v1054_v31 = vpop.permute.xlu1 %1053  ;;  %v567_v33 = vsel %vm239_vm5, %v4068_v29, 0.0 }
 0x438   :  { %v970_v32 = vpop.permute.xlu0 %969  ;;  %568 = vadd.xlane.f32.xlu1 %v567_v33  ;;  %v564_v35 = vsel %vm239_vm5, %v4070_v30, 0.0 }
 0x439   :  { %v3979_v34 = vpack.i.bf16 %v1054_v31, %v970_v32  ;;  %565 = vadd.xlane.f32.xlu0 %v564_v35 }
 0x43b   :  { %v588_v36 = vpop.permute.xlu1 %587 }
 0x43c   :  { %v637_v37 = vpop.permute.xlu0 %636  ;;  %v593_v38 = vsel %vm243_vm4, %v588_v36, 0 }
 0x43d   :  { %v642_v39 = vsel %vm243_vm4, %v637_v37, 0  ;;  %3696 = vmatpush3.bf16.msra.mxu0 %v593_v38 }
 0x43e   :  { %3702 = vmatpush3.bf16.msra.mxu1 %v642_v39  ;;  %v4072_v40 = vpop.eup %4071  ;;  %3707 = vmatprep.subr.bf16.mxu0 %v4171_v2 }
 0x43f   :  { %3713 = vmatprep.subr.bf16.mxu1 %v4171_v2  ;;  %v4074_v41 = vpop.eup %4073  ;;  %v573_v42 = vsel %vm239_vm5, %v4072_v40, 0.0  ;;  %v686_v45 = vpop.permute.xlu1 %685 }
 0x440   :  { %574 = vadd.xlane.f32.xlu0 %v573_v42  ;;  %v570_v43 = vsel %vm239_vm5, %v4074_v41, 0.0  ;;  %v735_v47 = vpop.permute.xlu0 %734  ;;  %v691_v59 = vsel %vm243_vm4, %v686_v45, 0 }
 0x441   :  { %571 = vadd.xlane.f32.xlu1 %v570_v43  ;;  %v740_v58 = vsel %vm243_vm4, %v735_v47, 0 }
 0x443   :  { %v922_v46 = vpop.permute.xlu1 %921 }
 0x452   :  { %1089 = vrot.lane.b32.xlu1 %v4394_v11, %s4895_s1 }
 0x456   :  { %1005 = vrot.lane.b32.xlu0 %v4394_v11, %s4177_s0 }
 0x474   :  { %3973 = vxpose.xlu0.b32.start.end [1/1] (short) (narrow) %v3972_v44, 8 }
 0x47b   :  { %3980 = vxpose.xlu1.b32.start.end [1/1] (short) (narrow) %v3979_v34, 8 }
 0x4c5   :  { %v569_v48 = vpop.xlane.xlu1 %568 }
 0x4c6   :  { %4075 = vrcp.f32 %v569_v48  ;;  %v566_v49 = vpop.xlane.xlu0 %565 }
 0x4c7   :  { %4077 = vrcp.f32 %v566_v49 }
 0x4cd   :  { %v575_v50 = vpop.xlane.xlu0 %574 }
 0x4ce   :  { %v572_v51 = vpop.xlane.xlu1 %571  ;;  %4079 = vrcp.f32 %v575_v50 }
 0x4cf   :  { %4081 = vrcp.f32 %v572_v51 }
 0x4d0   :  { %v4076_v52 = vpop.eup %4075 }
 0x4d1   :  { %v4078_v53 = vpop.eup %4077  ;;  %v581_v54 = vmul.f32 %v4076_v52, %v4068_v29  ;;  %v1006_v3 = vpop.permute.xlu0 %1005 }
 0x4d2   :  { %v580_v55 = vmul.f32 %v4078_v53, %v4070_v30  ;;  %v1090_v7 = vpop.permute.xlu1 %1089 }
 0x4d3   :  { %v635_v56 = vpack.c.bf16 %v581_v54, %v581_v54 }
 0x4d4   :  { %v584_v57 = vpack.c.bf16 %v580_v55, %v580_v55 }
 0x4d5   :  { %3704 = vmatmul.mubr.msk.bf16.vlgmr.msra.gmra.mrb[12].mxu1 %vm239_vm5, %v635_v56 }
 0x4d6   :  { %3698 = vmatmul.mubr.msk.bf16.vlgmr.msra.gmra.mrb[12].mxu0 %vm239_vm5, %v584_v57  ;;  %3714 = vmatpush3.bf16.msra.mxu1 %v740_v58  ;;  %v1182_v58 = vpack.c.bf16 %v4342_v25, %v4342_v25 }
 0x4d7   :  { %3708 = vmatpush3.bf16.msra.mxu0 %v691_v59  ;;  %3709 = vmatprep.mubr.msk.bf16.mxu0 %vm4172_vm1, %v4171_v2 }
 0x4d8   :  { %v4080_v60 = vpop.eup %4079  ;;  %3715 = vmatprep.mubr.msk.bf16.mxu1 %vm4172_vm1, %v4171_v2  ;;  %3719 = vmatprep.subr.bf16.mxu0 %v4171_v2 }
 0x4d9   :  { %v4082_v61 = vpop.eup %4081  ;;  %v583_v62 = vmul.f32 %v4080_v60, %v4072_v40  ;;  %3725 = vmatprep.subr.bf16.mxu1 %v4171_v2 }
 0x4da   :  { %v582_v63 = vmul.f32 %v4082_v61, %v4074_v41 }
 0x4db   :  { %v733_v0 = vpack.c.bf16 %v583_v62, %v583_v62 }
 0x4dc   :  { %v684_v1 = vpack.c.bf16 %v582_v63, %v582_v63 }
 0x4dd   :  { %3716 = vmatmul.mubr.msk.bf16.vlgmr.msra.gmra.mrb[16].mxu1 %vm239_vm5, %v733_v0 }
 0x4de   :  { %3710 = vmatmul.mubr.msk.bf16.vlgmr.msra.gmra.mrb[16].mxu0 %vm239_vm5, %v684_v1  ;;  %3727 = vmatprep.mubr.msk.bf16.mxu1 %vm4172_vm1, %v4171_v2 }
 0x4df   :  { %3721 = vmatprep.mubr.msk.bf16.mxu0 %vm4172_vm1, %v4171_v2 }
 0x4f4   :  { %v3974_v4 = vpop.trf.xlu0 }
 0x4f5   :  { %v3978_v5 = vunpack.i.h.bf16 %v3974_v4  ;;  %v3975_v6 = vunpack.i.l.bf16 %v3974_v4 }
 0x4f7   :  { %v837_v8 = vpack.c.bf16 %v3975_v6, %v3975_v6  ;;  %v919_v9 = vpack.c.bf16 %v3978_v5, %v3978_v5 }
 0x4f9   :  { %v842_v10 = vsel %vm243_vm4, %v837_v8, 0  ;;  %v927_v12 = vsel %vm243_vm4, %v919_v9, 0 }
 0x4fa   :  { %3720 = vmatpush3.bf16.msra.mxu0 %v842_v10  ;;  %3726 = vmatpush3.bf16.msra.mxu1 %v927_v12 }
 0x4fb   :  { %v3981_v13 = vpop.trf.xlu1  ;;  %3731 = vmatprep.subr.bf16.mxu0 %v4171_v2  ;;  %3737 = vmatprep.subr.bf16.mxu1 %v4171_v2 }
 0x4fc   :  { %v3985_v14 = vunpack.i.h.bf16 %v3981_v13  ;;  %v3982_v15 = vunpack.i.l.bf16 %v3981_v13 }
 0x4fd   :  { %3722 = vmatmul.mubr.msk.bf16.vlgmr.msra.gmra.mrb[20].mxu0 %vm239_vm5, %v4394_v11  ;;  %3728 = vmatmul.mubr.msk.bf16.vlgmr.msra.gmra.mrb[20].mxu1 %vm239_vm5, %v922_v46 }
 0x4fe   :  { %v1004_v16 = vpack.c.bf16 %v3982_v15, %v3982_v15  ;;  %v1088_v19 = vpack.c.bf16 %v3985_v14, %v3985_v14  ;;  %3733 = vmatprep.mubr.msk.bf16.mxu0 %vm4172_vm1, %v4171_v2  ;;  %3739 = vmatprep.mubr.msk.bf16.mxu1 %vm4172_vm1, %v4171_v2 }
 0x500   :  { %v1011_v20 = vsel %vm243_vm4, %v1004_v16, 0  ;;  %v1095_v21 = vsel %vm243_vm4, %v1088_v19, 0 }
 0x501   :  { %3732 = vmatpush3.bf16.msra.mxu0 %v1011_v20  ;;  %3738 = vmatpush3.bf16.msra.mxu1 %v1095_v21 }
 0x502   :  { %3743 = vmatprep.subr.bf16.mxu0 %v4171_v2  ;;  %3749 = vmatprep.subr.bf16.mxu1 %v4171_v2 }
 0x505   :  { %3734 = vmatmul.mubr.msk.bf16.vlgmr.msra.gmra.mrb[24].mxu0 %vm239_vm5, %v1006_v3  ;;  %3740 = vmatmul.mubr.msk.bf16.vlgmr.msra.gmra.mrb[24].mxu1 %vm239_vm5, %v1090_v7 }
 0x506   :  { %3745 = vmatprep.mubr.msk.bf16.mxu0 %vm4172_vm1, %v4171_v2  ;;  %3751 = vmatprep.mubr.msk.bf16.mxu1 %vm4172_vm1, %v4171_v2 }
 0x5a8   :  { %v4448_v11 = vpop.f32.mrb[12].mxu1 }
 0x5a9   :  { %v4450_v22 = vpop.f32.mrb[12].mxu0  ;;  %v3705_v23 = vpop.f32.mrb[13].mxu1 }
 0x5aa   :  { %v3699_v24 = vpop.f32.mrb[13].mxu0  ;;  %v681_v26 = vpop.f32.mrb[14].mxu1 }
 0x5ab   :  { %v632_v27 = vpop.f32.mrb[14].mxu0  ;;  %v3706_v28 = vpop.f32.mrb[15].mxu1 }
 0x5ac   :  { %v3700_v29 = vpop.f32.mrb[15].mxu0 }
 0x5b0   :  { %v4452_v30 = vpop.f32.mrb[16].mxu1 }
 0x5b1   :  { %v4454_v31 = vpop.f32.mrb[16].mxu0  ;;  %v3717_v32 = vpop.f32.mrb[17].mxu1 }
 0x5b2   :  { %v3711_v33 = vpop.f32.mrb[17].mxu0  ;;  %v779_v34 = vpop.f32.mrb[18].mxu1 }
 0x5b3   :  { %v730_v35 = vpop.f32.mrb[18].mxu0  ;;  %v3718_v36 = vpop.f32.mrb[19].mxu1 }
 0x5b4   :  { %v3712_v37 = vpop.f32.mrb[19].mxu0 }
 0x5d0   :  { %v878_v38 = vpop.f32.mrb[20].mxu0  ;;  %v963_v39 = vpop.f32.mrb[20].mxu1 }
 0x5d1   :  { %v3723_v40 = vpop.f32.mrb[21].mxu0  ;;  %v3729_v41 = vpop.f32.mrb[21].mxu1  ;;  %v1140_v42 = vsel %vm239_vm5, %v963_v39, -inf  ;;  %v1137_v43 = vsel %vm239_vm5, %v878_v38, -inf }
 0x5d2   :  { %1141 = vmax.xlane.f32.xlu1 %v1140_v42  ;;  %v966_v44 = vpop.f32.mrb[22].mxu1  ;;  %1138 = vmax.xlane.f32.xlu0 %v1137_v43  ;;  %v881_v45 = vpop.f32.mrb[22].mxu0 }
 0x5d3   :  { %v3724_v46 = vpop.f32.mrb[23].mxu0  ;;  %v3730_v47 = vpop.f32.mrb[23].mxu1 }
 0x5d4   :  { %v4046_v47 = vld [vmem:[%s4866_s6] sm:$0xff]  }
 0x5d8   :  { %v1047_v48 = vpop.f32.mrb[24].mxu0  ;;  %v1131_v49 = vpop.f32.mrb[24].mxu1 }
 0x5d9   :  { %v3735_v50 = vpop.f32.mrb[25].mxu0  ;;  %v3741_v51 = vpop.f32.mrb[25].mxu1  ;;  %v1143_v52 = vsel %vm239_vm5, %v1047_v48, -inf  ;;  %v1146_v57 = vsel %vm239_vm5, %v1131_v49, -inf }
 0x5da   :  { %v1134_v53 = vpop.f32.mrb[26].mxu1  ;;  %1144 = vmax.xlane.f32.xlu0 %v1143_v52  ;;  %v1050_v54 = vpop.f32.mrb[26].mxu0  ;;  %v4047_v52 = vld [vmem:[%s4866_s6 + $0x8] sm:$0xff]  }
 0x5db   :  { %v3736_v55 = vpop.f32.mrb[27].mxu0  ;;  %v3742_v56 = vpop.f32.mrb[27].mxu1 }
 0x5de   :  { %1147 = vmax.xlane.f32.xlu0 %v1146_v57 }
 0x5e3   :  { %1184 = vrot.lane.b32.xlu1 %v1182_v58, %s4893_s22 }
 0x65f   :  { %v1142_v59 = vpop.xlane.xlu1 %1141  ;;  %v1139_v60 = vpop.xlane.xlu0 %1138 }
 0x660   :  { %v1150_v61 = vsub.f32 %v963_v39, %v1142_v59  ;;  %v1149_v62 = vsub.f32 %v878_v38, %v1139_v60 }
 0x662   :  { %v1155_v63 = vmul.f32 1.442695, %v1150_v61  ;;  %v1153_v0 = vmul.f32 1.442695, %v1149_v62 }
 0x663   :  { %v1185_v1 = vpop.permute.xlu1 %1184 }
 0x664   :  { %4083 = vpow2.f32 %v1155_v63  ;;  %v1190_v3 = vsel %vm243_vm4, %v1185_v1, 0 }
 0x665   :  { %4085 = vpow2.f32 %v1153_v0  ;;  %3744 = vmatpush3.bf16.msra.mxu0 %v1190_v3 }
 0x666   :  { %3755 = vmatprep.subr.bf16.mxu0 %v4171_v2 }
 0x667   :  { %v1145_v4 = vpop.xlane.xlu0 %1144 }
 0x668   :  { %v1151_v5 = vsub.f32 %v1047_v48, %v1145_v4 }
 0x66a   :  { %v1157_v6 = vmul.f32 1.442695, %v1151_v5 }
 0x66b   :  { %v1148_v25 = vpop.xlane.xlu0 %1147 }
 0x66c   :  { %4087 = vpow2.f32 %v1157_v6  ;;  %v1152_v7 = vsub.f32 %v1131_v49, %v1148_v25 }
 0x66e   :  { %v4084_v8 = vpop.eup %4083  ;;  %v1159_v9 = vmul.f32 1.442695, %v1152_v7 }
 0x66f   :  { %v4086_v10 = vpop.eup %4085  ;;  %v1164_v12 = vsel %vm239_vm5, %v4084_v8, 0.0 }
 0x670   :  { %4089 = vpow2.f32 %v1159_v9  ;;  %v1161_v13 = vsel %vm239_vm5, %v4086_v10, 0.0  ;;  %1165 = vadd.xlane.f32.xlu0 %v1164_v12 }
 0x671   :  { %1162 = vadd.xlane.f32.xlu1 %v1161_v13 }
 0x676   :  { %v4088_v14 = vpop.eup %4087 }
 0x677   :  { %v1167_v15 = vsel %vm239_vm5, %v4088_v14, 0.0 }
 0x678   :  { %1168 = vadd.xlane.f32.xlu1 %v1167_v15 }
 0x67a   :  { %v4090_v16 = vpop.eup %4089 }
 0x67b   :  { %v1170_v19 = vsel %vm239_vm5, %v4090_v16, 0.0 }
 0x67c   :  { %1171 = vadd.xlane.f32.xlu0 %v1170_v19 }
 0x689   :  { %1282 = vrot.lane.b32.xlu1 %v1182_v58, %s4884_s23  ;;  %s4888_s23 = smov 24  }
 0x68d   :  { %1331 = vrot.lane.b32.xlu1 %v1182_v58, %s4886_s2  ;;  %s4890_s2 = smov 8  }
 0x692   :  { %1233 = vrot.lane.b32.xlu0 %v1182_v58, %s4891_s24  ;;  %s4914_s24 = smov 24  }
 0x6fd   :  { %v1166_v20 = vpop.xlane.xlu0 %1165 }
 0x6fe   :  { %v1163_v21 = vpop.xlane.xlu1 %1162  ;;  %4091 = vrcp.f32 %v1166_v20 }
 0x6ff   :  { %4093 = vrcp.f32 %v1163_v21 }
 0x705   :  { %v1169_v23 = vpop.xlane.xlu1 %1168 }
 0x706   :  { %4095 = vrcp.f32 %v1169_v23 }
 0x708   :  { %v4092_v24 = vpop.eup %4091 }
 0x709   :  { %v4094_v26 = vpop.eup %4093  ;;  %v1283_v27 = vpop.permute.xlu1 %1282  ;;  %v1178_v32 = vmul.f32 %v4092_v24, %v4084_v8 }
 0x70a   :  { %v1172_v28 = vpop.xlane.xlu0 %1171  ;;  %v1177_v29 = vmul.f32 %v4094_v26, %v4086_v10  ;;  %v1288_v35 = vsel %vm243_vm4, %v1283_v27, 0 }
 0x70b   :  { %4097 = vrcp.f32 %v1172_v28  ;;  %v1232_v39 = vpack.c.bf16 %v1178_v32, %v1178_v32 }
 0x70c   :  { %v1181_v33 = vpack.c.bf16 %v1177_v29, %v1177_v29 }
 0x70d   :  { %v1332_v37 = vpop.permute.xlu1 %1331 }
 0x70e   :  { %v1234_v34 = vpop.permute.xlu0 %1233  ;;  %3746 = vmatmul.mubr.msk.bf16.vlgmr.msra.gmra.mrb[28].mxu0 %vm239_vm5, %v1181_v33  ;;  %v1337_v41 = vsel %vm243_vm4, %v1332_v37, 0 }
 0x70f   :  { %v1239_v36 = vsel %vm243_vm4, %v1234_v34, 0  ;;  %3756 = vmatpush3.bf16.msra.mxu0 %v1288_v35  ;;  %3757 = vmatprep.mubr.msk.bf16.mxu0 %vm4172_vm1, %v4171_v2 }
 0x710   :  { %3750 = vmatpush3.bf16.msra.mxu1 %v1239_v36  ;;  %v4096_v38 = vpop.eup %4095  ;;  %3767 = vmatprep.subr.bf16.mxu0 %v4171_v2 }
 0x711   :  { %3761 = vmatprep.subr.bf16.mxu1 %v4171_v2  ;;  %v1179_v40 = vmul.f32 %v4096_v38, %v4088_v14 }
 0x713   :  { %3752 = vmatmul.mubr.msk.bf16.vlgmr.msra.gmra.mrb[28].mxu1 %vm239_vm5, %v1232_v39  ;;  %v1281_v42 = vpack.c.bf16 %v1179_v40, %v1179_v40 }
 0x714   :  { %3762 = vmatpush3.bf16.msra.mxu1 %v1337_v41  ;;  %3763 = vmatprep.mubr.msk.bf16.mxu1 %vm4172_vm1, %v4171_v2 }
 0x715   :  { %v4098_v43 = vpop.eup %4097  ;;  %3775 = vmatprep.subr.bf16.mxu1 %v4171_v2 }
 0x716   :  { %v1180_v44 = vmul.f32 %v4098_v43, %v4090_v16  ;;  %3758 = vmatmul.mubr.msk.bf16.vlgmr.msra.gmra.mrb[32].mxu0 %vm239_vm5, %v1281_v42  ;;  %v4049_v42 = vld [vmem:[%s4868_s8 + $0x8] sm:$0xff]   ;;  %v4050_v43 = vld [vmem:[%s4870_s10] sm:$0xff]  }
 0x717   :  { %3771 = vmatprep.mubr.msk.bf16.mxu0 %vm4172_vm1, %v4171_v2  ;;  %3768 = vmatpush3.bf16.msra.mxu0 %v4046_v47 }
 0x718   :  { %v1330_v45 = vpack.c.bf16 %v1180_v44, %v1180_v44  ;;  %3769 = vmatprep.subr.bf16.mxu0 %v4171_v2  ;;  %v4051_v44 = vld [vmem:[%s4870_s10 + $0x8] sm:$0xff]  }
 0x71b   :  { %3764 = vmatmul.mubr.msk.bf16.vlgmr.msra.gmra.mrb[32].mxu1 %vm239_vm5, %v1330_v45  ;;  %3770 = vmatpush3.bf16.msra.mxu0 %v4047_v52  ;;  %v3471_v52 = vld [vmem:[%s4872_s12] ss:$0 sm:$0xff] }
 0x71c   :  { %3779 = vmatprep.mubr.msk.bf16.mxu1 %vm4172_vm1, %v4171_v2  ;;  %3783 = vmatprep.subr.bf16.mxu0 %v4171_v2 }
 0x7e1   :  { %v1226_v46 = vpop.f32.mrb[28].mxu0 }
 0x7e2   :  { %v3747_v48 = vpop.f32.mrb[29].mxu0 }
 0x7e3   :  { %v1229_v49 = vpop.f32.mrb[30].mxu0 }
 0x7e4   :  { %v3748_v50 = vpop.f32.mrb[31].mxu0 }
 0x7e6   :  { %v1275_v51 = vpop.f32.mrb[28].mxu1 }
 0x7e7   :  { %v3986_v53 = vpack.i.bf16 %v1275_v51, %v4448_v11  ;;  %v3753_v54 = vpop.f32.mrb[29].mxu1 }
 0x7e8   :  { %v1278_v55 = vpop.f32.mrb[30].mxu1 }
 0x7e9   :  { %3987 = vrot.lane.b32.xlu0 %v3986_v53, %s4890_s2  ;;  %v3754_v56 = vpop.f32.mrb[31].mxu1  ;;  %v1324_v57 = vpop.f32.mrb[32].mxu0 }
 0x7ea   :  { %v3991_v58 = vpack.i.bf16 %v1324_v57, %v4454_v31  ;;  %v3759_v59 = vpop.f32.mrb[33].mxu0  ;;  %v3472_v57 = vld [vmem:[%s4873_s13] ss:$0 sm:$0xff] }
 0x7eb   :  { %v1327_v60 = vpop.f32.mrb[34].mxu0 }
 0x7ec   :  { %3992 = vrot.lane.b32.xlu1 %v3991_v58, %s4889_s25  ;;  %v3760_v61 = vpop.f32.mrb[35].mxu0 }
 0x7ee   :  { %v1373_v62 = vpop.f32.mrb[32].mxu1 }
 0x7ef   :  { %v3996_v11 = vpack.i.bf16 %v1373_v62, %v4452_v30  ;;  %v3765_v63 = vpop.f32.mrb[33].mxu1  ;;  %v4052_v62 = vld [vmem:[%s4870_s10 + $0x10] sm:$0xff]  }
 0x7f0   :  { %v1376_v0 = vpop.f32.mrb[34].mxu1  ;;  %v3473_v63 = vld [vmem:[%s4869_s9] ss:$0 sm:$0xff] }
 0x7f1   :  { %3997 = vrot.lane.b32.xlu0 %v3996_v11, %s4888_s23  ;;  %v3766_v1 = vpop.f32.mrb[35].mxu1  ;;  %v4053_v11 = vld [vmem:[%s4870_s10 + $0x18] sm:$0xff]   ;;  %s4908_s23 = smov 64  }
 0x85b   :  { %v3988_v3 = vpop.permute.xlu0 %3987 }
 0x85c   :  { %v3990_v5 = vunpack.i.h.bf16 %v3988_v3  ;;  %v3989_v6 = vunpack.i.l.bf16 %v3988_v3 }
 0x85e   :  { %v3993_v4 = vpop.permute.xlu1 %3992  ;;  %v794_v8 = vsel %vm239_vm5, %v4450_v22, %v3989_v6  ;;  %v1391_v30 = vsel %vm239_vm5, %v1226_v46, %v3990_v5  ;;  %v3467_v22 = vld [vmem:[%s4867_s7] ss:$0 sm:$0xff] }
 0x85f   :  { %v3995_v31 = vunpack.i.h.bf16 %v3993_v4  ;;  %v3994_v25 = vunpack.i.l.bf16 %v3993_v4 }
 0x861   :  { %v1392_v12 = vsel %vm795_vm6, %v1391_v30, %v3995_v31  ;;  %v796_v13 = vsel %vm795_vm6, %v794_v8, %v3994_v25  ;;  %v3477_v8 = vld [vmem:[%s4871_s11] ss:$0 sm:$0xff] }
 0x863   :  { %v3998_v7 = vpop.permute.xlu0 %3997 }
 0x864   :  { %v4000_v9 = vunpack.i.h.bf16 %v3998_v7  ;;  %v3999_v10 = vunpack.i.l.bf16 %v3998_v7 }
 0x866   :  { %v798_v14 = vsel %vm797_vm7, %v796_v13, %v3999_v10  ;;  %v1393_v15 = vsel %vm797_vm7, %v1392_v12, %v4000_v9 }
 0x867   :  { %v1398_v16 = vpack.c.bf16 %v1393_v15, %v798_v14 }
 0x869   :  { %3772 = vmatmul.mubr.msk.bf16.vlgmr.msra.gmra.mrb[36].mxu0 %vm155_vm3, %v1398_v16 }
 0x86a   :  { %3791 = vmatprep.mubr.msk.bf16.mxu0 %vm4172_vm1, %v4171_v2  ;;  %3784 = vmatpush3.bf16.msra.mxu0 %v4050_v43 }
 0x86b   :  { %3785 = vmatprep.subr.bf16.mxu0 %v4171_v2 }
 0x86e   :  { %3786 = vmatpush3.bf16.msra.mxu0 %v4051_v44 }
 0x86f   :  { %3787 = vmatprep.subr.bf16.mxu0 %v4171_v2 }
 0x872   :  { %3788 = vmatpush3.bf16.msra.mxu0 %v4052_v62 }
 0x873   :  { %3789 = vmatprep.subr.bf16.mxu0 %v4171_v2 }
 0x876   :  { %3790 = vmatpush3.bf16.msra.mxu0 %v4053_v11 }
 0x877   :  { %3809 = vmatprep.subr.bf16.mxu0 %v4171_v2 }
 0x93c   :  { %v1455_v19 = vpop.f32.mrb[36].mxu0 }
 0x93d   :  { %v1456_v20 = vadd.f32 %v3467_v22, %v1455_v19  ;;  %v3773_v21 = vpop.f32.mrb[37].mxu0 }
 0x93e   :  { %v1458_v23 = vpop.f32.mrb[38].mxu0 }
 0x93f   :  { %v1459_v24 = vadd.f32 %v3467_v22, %v1458_v23  ;;  %v3774_v26 = vpop.f32.mrb[39].mxu0  ;;  %v1462_v27 = vadd.f32 %v1456_v20, %v4328_v17 }
 0x941   :  { %v1466_v28 = vsel %vm155_vm3, %v1462_v27, 0.0  ;;  %v1463_v29 = vadd.f32 %v1459_v24, %v4330_v18  ;;  %v4048_v18 = vld [vmem:[%s4868_s8] sm:$0xff]  }
 0x942   :  { %1467 = vadd.xlane.f32.xlu1 %v1466_v28  ;;  %3776 = vmatpush3.bf16.msra.mxu1 %v4048_v18  ;;  %v3483_v18 = vld [vmem:[%s4874_s14] ss:$0 sm:$0xff] }
 0x943   :  { %v1469_v32 = vsel %vm155_vm3, %v1463_v29, 0.0  ;;  %3777 = vmatprep.subr.bf16.mxu1 %v4171_v2 }
 0x944   :  { %1470 = vadd.xlane.f32.xlu0 %v1469_v32 }
 0x946   :  { %3778 = vmatpush3.bf16.msra.mxu1 %v4049_v42 }
 0x947   :  { %3795 = vmatprep.subr.bf16.mxu1 %v4171_v2 }
 0x9cf   :  { %v1468_v33 = vpop.xlane.xlu1 %1467 }
 0x9d0   :  { %v1473_v34 = vmul.f32 0.03125, %v1468_v33 }
 0x9d1   :  { %v1471_v35 = vpop.xlane.xlu0 %1470 }
 0x9d2   :  { %v1475_v36 = vsub.f32 %v1462_v27, %v1473_v34  ;;  %v1474_v37 = vmul.f32 0.03125, %v1471_v35  ;;  %v4054_v34 = vld [vmem:[%s4904_s4 + $0x10] sm:$0xff]   ;;  %v4055_v35 = vld [vmem:[%s4904_s4 + $0x18] sm:$0xff]  }
 0x9d4   :  { %v1476_v38 = vsub.f32 %v1463_v29, %v1474_v37  ;;  %v1477_v39 = vmul.f32 %v1475_v36, %v1475_v36 }
 0x9d6   :  { %v1479_v40 = vsel %vm155_vm3, %v1477_v39, 0.0  ;;  %v1478_v41 = vmul.f32 %v1476_v38, %v1476_v38 }
 0x9d7   :  { %1480 = vadd.xlane.f32.xlu0 %v1479_v40 }
 0x9d8   :  { %v1482_v17 = vsel %vm155_vm3, %v1478_v41, 0.0 }
 0x9d9   :  { %1483 = vadd.xlane.f32.xlu1 %v1482_v17 }
 0xa64   :  { %v1481_v45 = vpop.xlane.xlu0 %1480 }
 0xa65   :  { %v1485_v46 = vmul.f32 0.03125, %v1481_v45 }
 0xa66   :  { %v1484_v47 = vpop.xlane.xlu1 %1483 }
 0xa67   :  { %v1487_v48 = vadd.f32 1e-05, %v1485_v46  ;;  %v1486_v49 = vmul.f32 0.03125, %v1484_v47  ;;  %v3484_v46 = vld [vmem:[%s4875_s15] ss:$0 sm:$0xff] }
 0xa69   :  { %4099 = vrsqrt.f32 %v1487_v48  ;;  %v1488_v50 = vadd.f32 1e-05, %v1486_v49 }
 0xa6b   :  { %4101 = vrsqrt.f32 %v1488_v50 }
 0xa73   :  { %v4100_v51 = vpop.eup %4099 }
 0xa74   :  { %v1491_v53 = vmul.f32 %v4100_v51, %v1475_v36  ;;  %v3490_v51 = vld [vmem:[%s4865_s5 + $0x1] ss:$0 sm:$0xff]  ;;  %s4907_s5 = smov 104  }
 0xa75   :  { %v4102_v54 = vpop.eup %4101 }
 0xa76   :  { %v1499_v55 = vmul.f32 %v3471_v52, %v1491_v53  ;;  %v1492_v56 = vmul.f32 %v4102_v54, %v1476_v38 }
 0xa78   :  { %v1500_v58 = vmul.f32 %v3471_v52, %v1492_v56  ;;  %v1507_v59 = vadd.f32 %v3472_v57, %v1499_v55 }
 0xa7a   :  { %v1508_v60 = vadd.f32 %v3472_v57, %v1500_v58 }
 0xa7c   :  { %v1513_v61 = vpack.c.bf16 %v1508_v60, %v1507_v59 }
 0xa7e   :  { %3780 = vmatmul.mubr.msk.bf16.vlgmr.msra.gmra.mrb[36].mxu1 %vm155_vm3, %v1513_v61 }
 0xa7f   :  { %3799 = vmatprep.mubr.msk.bf16.mxu1 %vm4172_vm1, %v4171_v2  ;;  %3796 = vmatpush3.bf16.msra.mxu1 %v4054_v34 }
 0xa80   :  { %3797 = vmatprep.subr.bf16.mxu1 %v4171_v2 }
 0xa83   :  { %3798 = vmatpush3.bf16.msra.mxu1 %v4055_v35 }
 0xa84   :  { %3803 = vmatprep.subr.bf16.mxu1 %v4171_v2 }
 0xb51   :  { %v1570_v0 = vpop.f32.mrb[36].mxu1 }
 0xb52   :  { %v1571_v1 = vadd.f32 %v3473_v63, %v1570_v0  ;;  %v3781_v3 = vpop.f32.mrb[37].mxu1 }
 0xb53   :  { %v1573_v4 = vpop.f32.mrb[38].mxu1 }
 0xb54   :  { %v1574_v5 = vadd.f32 %v3473_v63, %v1573_v4  ;;  %v3782_v6 = vpop.f32.mrb[39].mxu1  ;;  %v1577_v31 = vmax.f32 %v1571_v1, 0.0 }
 0xb56   :  { %v1578_v25 = vmax.f32 %v1574_v5, 0.0 }
 0xb58   :  { %v1587_v7 = vpack.c.bf16 %v1578_v25, %v1577_v31 }
 0xb5a   :  { %3792 = vmatmul.mubr.msk.bf16.vlgmr.msra.gmra.mrb[40].mxu0 %vm1619_vm8, %v1587_v7 }
 0xb5b   :  { %3811 = vmatprep.mubr.msk.bf16.mxu0 %vm4172_vm1, %v4171_v2 }
 0xc2d   :  { %v1657_v30 = vpop.f32.mrb[40].mxu0 }
 0xc2e   :  { %v1658_v9 = vadd.f32 %v3477_v8, %v1657_v30  ;;  %v3793_v10 = vpop.f32.mrb[41].mxu0 }
 0xc2f   :  { %v1660_v12 = vpop.f32.mrb[42].mxu0 }
 0xc30   :  { %v1661_v13 = vadd.f32 %v3477_v8, %v1660_v12  ;;  %v3794_v14 = vpop.f32.mrb[43].mxu0  ;;  %v1664_v15 = vadd.f32 %v1658_v9, %v1507_v59 }
 0xc32   :  { %v1668_v16 = vsel %vm155_vm3, %v1664_v15, 0.0  ;;  %v1665_v22 = vadd.f32 %v1661_v13, %v1508_v60 }
 0xc33   :  { %1669 = vadd.xlane.f32.xlu0 %v1668_v16 }
 0xc34   :  { %v1671_v19 = vsel %vm155_vm3, %v1665_v22, 0.0 }
 0xc35   :  { %1672 = vadd.xlane.f32.xlu1 %v1671_v19 }
 0xcc0   :  { %v1670_v20 = vpop.xlane.xlu0 %1669 }
 0xcc1   :  { %v1674_v21 = vmul.f32 0.03125, %v1670_v20 }
 0xcc2   :  { %v1673_v23 = vpop.xlane.xlu1 %1672 }
 0xcc3   :  { %v1676_v24 = vsub.f32 %v1664_v15, %v1674_v21  ;;  %v1675_v26 = vmul.f32 0.03125, %v1673_v23 }
 0xcc5   :  { %v1677_v27 = vsub.f32 %v1665_v22, %v1675_v26  ;;  %v1678_v28 = vmul.f32 %v1676_v24, %v1676_v24 }
 0xcc7   :  { %v1680_v29 = vsel %vm155_vm3, %v1678_v28, 0.0  ;;  %v1679_v32 = vmul.f32 %v1677_v27, %v1677_v27 }
 0xcc8   :  { %1681 = vadd.xlane.f32.xlu0 %v1680_v29 }
 0xcc9   :  { %v1683_v33 = vsel %vm155_vm3, %v1679_v32, 0.0 }
 0xcca   :  { %1684 = vadd.xlane.f32.xlu1 %v1683_v33 }
 0xd55   :  { %v1682_v36 = vpop.xlane.xlu0 %1681 }
 0xd56   :  { %v1686_v37 = vmul.f32 0.03125, %v1682_v36 }
 0xd57   :  { %v1685_v38 = vpop.xlane.xlu1 %1684 }
 0xd58   :  { %v1688_v39 = vadd.f32 1e-05, %v1686_v37  ;;  %v1687_v40 = vmul.f32 0.03125, %v1685_v38 }
 0xd5a   :  { %4103 = vrsqrt.f32 %v1688_v39  ;;  %v1689_v41 = vadd.f32 1e-05, %v1687_v40 }
 0xd5c   :  { %4105 = vrsqrt.f32 %v1689_v41 }
 0xd64   :  { %v4104_v17 = vpop.eup %4103 }
 0xd65   :  { %v1692_v42 = vmul.f32 %v4104_v17, %v1676_v24 }
 0xd66   :  { %v4106_v43 = vpop.eup %4105 }
 0xd67   :  { %v1700_v44 = vmul.f32 %v3483_v18, %v1692_v42  ;;  %v1693_v45 = vmul.f32 %v4106_v43, %v1677_v27 }
 0xd69   :  { %v1701_v47 = vmul.f32 %v3483_v18, %v1693_v45  ;;  %v4583_v48 = vadd.f32 %v3484_v46, %v1700_v44 }
 0xd6b   :  { %v4585_v49 = vadd.f32 %v3484_v46, %v1701_v47 }
 0xd6d   :  { %v1715_v50 = vpack.c.bf16 %v4585_v49, %v4583_v48 }
 0xd6f   :  { %3800 = vmatmul.mubr.msk.bf16.vlgmr.msra.gmra.mrb[40].mxu1 %vm155_vm3, %v1715_v50 }
 0xd70   :  { %3805 = vmatprep.mubr.msk.bf16.mxu1 %vm4172_vm1, %v4171_v2 }
 0xe42   :  { %v1773_v52 = vpop.f32.mrb[40].mxu1 }
 0xe43   :  { %v4595_v53 = vadd.f32 %v3490_v51, %v1773_v52  ;;  %v3801_v54 = vpop.f32.mrb[41].mxu1 }
 0xe44   :  { %v1776_v55 = vpop.f32.mrb[42].mxu1 }
 0xe45   :  { %v4597_v56 = vadd.f32 %v3490_v51, %v1776_v55  ;;  %1865 = vrot.lane.b32.xlu1 %v4595_v53, %s4176_s30  ;;  %1783 = vrot.lane.b32.xlu0 %v4595_v53, %s4174_s28  ;;  %v3802_v57 = vpop.f32.mrb[43].mxu1  ;;  %v1780_v58 = vmul.f32 0.35355338, %v4595_v53  ;;  %v2163_v40 = vpack.c.bf16 %v4595_v53, %v4595_v53 }
 0xe47   :  { %v1781_v59 = vpack.c.bf16 %v1780_v58, %v1780_v58 }
 0xe49   :  { %1950 = vrot.lane.b32.xlu1 %v4595_v53, %s4173_s27  ;;  %2034 = vrot.lane.b32.xlu0 %v4595_v53, %s4175_s29 }
 0xe4d   :  { %1986 = vrot.lane.b32.xlu0 %v1781_v59, %s4177_s0  ;;  %1902 = vrot.lane.b32.xlu1 %v1781_v59, %s4178_s21 }
 0xe51   :  { %2070 = vrot.lane.b32.xlu1 %v1781_v59, %s4907_s5 }
 0xeb7   :  { %v1866_v60 = vpop.permute.xlu1 %1865  ;;  %v1784_v61 = vpop.permute.xlu0 %1783 }
 0xeb8   :  { %v4001_v62 = vpack.i.bf16 %v1866_v60, %v1784_v61 }
 0xeba   :  { %4002 = vxpose.xlu0.b32.start.end [1/1] (short) (narrow) %v4001_v62, 8 }
 0xebb   :  { %v1951_v11 = vpop.permute.xlu1 %1950  ;;  %v2035_v63 = vpop.permute.xlu0 %2034 }
 0xebc   :  { %v4008_v0 = vpack.i.bf16 %v2035_v63, %v1951_v11  ;;  %v2375_v63 = vmul.f32 0.35355338, %v4597_v56 }
 0xebe   :  { %4009 = vxpose.xlu1.b32.start.end [1/1] (short) (narrow) %v4008_v0, 8  ;;  %v4656_v0 = vpack.c.bf16 %v2375_v63, %v2375_v63 }
 0xebf   :  { %v1903_v1 = vpop.permute.xlu1 %1902  ;;  %v1987_v3 = vpop.permute.xlu0 %1986 }
 0xec3   :  { %v2071_v4 = vpop.permute.xlu1 %2070 }
 0xf3a   :  { %v4003_v5 = vpop.trf.xlu0 }
 0xf3b   :  { %v4007_v6 = vunpack.i.h.bf16 %v4003_v5  ;;  %v4004_v31 = vunpack.i.l.bf16 %v4003_v5 }
 0xf3d   :  { %v1818_v25 = vpack.c.bf16 %v4004_v31, %v4004_v31  ;;  %v1900_v7 = vpack.c.bf16 %v4007_v6, %v4007_v6 }
 0xf3e   :  { %v4010_v8 = vpop.trf.xlu1 }
 0xf3f   :  { %v1823_v30 = vsel %vm243_vm4, %v1818_v25, 0  ;;  %v1908_v9 = vsel %vm243_vm4, %v1900_v7, 0  ;;  %v4014_v10 = vunpack.i.h.bf16 %v4010_v8  ;;  %v4011_v12 = vunpack.i.l.bf16 %v4010_v8 }
 0xf40   :  { %3804 = vmatpush3.bf16.msra.mxu1 %v1823_v30  ;;  %3810 = vmatpush3.bf16.msra.mxu0 %v1908_v9 }
 0xf41   :  { %3815 = vmatprep.subr.bf16.mxu1 %v4171_v2  ;;  %3821 = vmatprep.subr.bf16.mxu0 %v4171_v2  ;;  %v2069_v13 = vpack.c.bf16 %v4014_v10, %v4014_v10  ;;  %v1985_v14 = vpack.c.bf16 %v4011_v12, %v4011_v12 }
 0xf43   :  { %3806 = vmatmul.mubr.msk.bf16.vlgmr.msra.gmra.mrb[44].mxu1 %vm239_vm5, %v1781_v59  ;;  %3812 = vmatmul.mubr.msk.bf16.vlgmr.msra.gmra.mrb[44].mxu0 %vm239_vm5, %v1903_v1  ;;  %v2076_v15 = vsel %vm243_vm4, %v2069_v13, 0  ;;  %v1992_v16 = vsel %vm243_vm4, %v1985_v14, 0 }
 0xf44   :  { %3822 = vmatpush3.bf16.msra.mxu0 %v2076_v15  ;;  %3817 = vmatprep.mubr.msk.bf16.mxu1 %vm4172_vm1, %v4171_v2 }
 0xf45   :  { %3816 = vmatpush3.bf16.msra.mxu1 %v1992_v16  ;;  %3823 = vmatprep.mubr.msk.bf16.mxu0 %vm4172_vm1, %v4171_v2 }
 0xf46   :  { %3827 = vmatprep.subr.bf16.mxu1 %v4171_v2  ;;  %3833 = vmatprep.subr.bf16.mxu0 %v4171_v2 }
 0xf4b   :  { %3818 = vmatmul.mubr.msk.bf16.vlgmr.msra.gmra.mrb[48].mxu1 %vm239_vm5, %v1987_v3  ;;  %3824 = vmatmul.mubr.msk.bf16.vlgmr.msra.gmra.mrb[48].mxu0 %vm239_vm5, %v2071_v4 }
 0xf4c   :  { %3829 = vmatprep.mubr.msk.bf16.mxu1 %vm4172_vm1, %v4171_v2  ;;  %3835 = vmatprep.mubr.msk.bf16.mxu0 %vm4172_vm1, %v4171_v2 }
0x1016   :  { %v1859_v22 = vpop.f32.mrb[44].mxu1  ;;  %v1944_v19 = vpop.f32.mrb[44].mxu0 }
0x1017   :  { %v3807_v20 = vpop.f32.mrb[45].mxu1  ;;  %v3813_v21 = vpop.f32.mrb[45].mxu0  ;;  %v2118_v23 = vsel %vm239_vm5, %v1859_v22, -inf  ;;  %v2121_v24 = vsel %vm239_vm5, %v1944_v19, -inf }
0x1018   :  { %2119 = vmax.xlane.f32.xlu0 %v2118_v23  ;;  %v1862_v26 = vpop.f32.mrb[46].mxu1  ;;  %2122 = vmax.xlane.f32.xlu1 %v2121_v24  ;;  %v1947_v27 = vpop.f32.mrb[46].mxu0 }
0x1019   :  { %v3808_v28 = vpop.f32.mrb[47].mxu1  ;;  %v3814_v29 = vpop.f32.mrb[47].mxu0 }
0x101e   :  { %v2028_v32 = vpop.f32.mrb[48].mxu1  ;;  %v2112_v33 = vpop.f32.mrb[48].mxu0 }
0x101f   :  { %v3819_v34 = vpop.f32.mrb[49].mxu1  ;;  %v3825_v35 = vpop.f32.mrb[49].mxu0  ;;  %v2124_v41 = vsel %vm239_vm5, %v2028_v32, -inf  ;;  %v2127_v17 = vsel %vm239_vm5, %v2112_v33, -inf }
0x1020   :  { %v2031_v36 = vpop.f32.mrb[50].mxu1  ;;  %v2115_v37 = vpop.f32.mrb[50].mxu0 }
0x1021   :  { %v3820_v38 = vpop.f32.mrb[51].mxu1  ;;  %v3826_v39 = vpop.f32.mrb[51].mxu0 }
0x1029   :  { %2378 = vrot.lane.b32.xlu1 %v4597_v56, %s4174_s28 }
0x102d   :  { %2545 = vrot.lane.b32.xlu1 %v4597_v56, %s4173_s27  ;;  %s4911_s27 = smov 48  }
0x102e   :  { %2460 = vrot.lane.b32.xlu0 %v4597_v56, %s4176_s30 }
0x1031   :  { %2165 = vrot.lane.b32.xlu1 %v2163_v40, %s4908_s23 }
0x1032   :  { %2629 = vrot.lane.b32.xlu0 %v4597_v56, %s4175_s29 }
0x1035   :  { %2214 = vrot.lane.b32.xlu1 %v2163_v40, %s4909_s3 }
0x1039   :  { %2312 = vrot.lane.b32.xlu1 %v2163_v40, %s4910_s26 }
0x1051   :  { %2125 = vmax.xlane.f32.xlu0 %v2124_v41 }
0x1055   :  { %2128 = vmax.xlane.f32.xlu0 %v2127_v17 }
0x106b   :  { %2263 = vrot.lane.b32.xlu0 %v2163_v40, %s4911_s27 }
0x10a5   :  { %v2120_v18 = vpop.xlane.xlu0 %2119  ;;  %v2123_v42 = vpop.xlane.xlu1 %2122 }
0x10a6   :  { %v2130_v43 = vsub.f32 %v1859_v22, %v2120_v18  ;;  %v2131_v44 = vsub.f32 %v1944_v19, %v2123_v42 }
0x10a8   :  { %v2134_v45 = vmul.f32 1.442695, %v2130_v43  ;;  %v2136_v46 = vmul.f32 1.442695, %v2131_v44 }
0x10a9   :  { %v2461_v47 = vpop.permute.xlu0 %2460  ;;  %v2379_v50 = vpop.permute.xlu1 %2378 }
0x10aa   :  { %4107 = vpow2.f32 %v2134_v45  ;;  %v4015_v51 = vpack.i.bf16 %v2461_v47, %v2379_v50 }
0x10ab   :  { %4109 = vpow2.f32 %v2136_v46 }
0x10ad   :  { %v2630_v52 = vpop.permute.xlu0 %2629  ;;  %v2546_v53 = vpop.permute.xlu1 %2545 }
0x10ae   :  { %v4022_v54 = vpack.i.bf16 %v2630_v52, %v2546_v53 }
0x10b1   :  { %v2166_v55 = vpop.permute.xlu1 %2165 }
0x10b2   :  { %v2171_v57 = vsel %vm243_vm4, %v2166_v55, 0 }
0x10b3   :  { %3828 = vmatpush3.bf16.msra.mxu1 %v2171_v57 }
0x10b4   :  { %v4108_v58 = vpop.eup %4107  ;;  %3839 = vmatprep.subr.bf16.mxu1 %v4171_v2 }
0x10b5   :  { %v4110_v59 = vpop.eup %4109  ;;  %v2215_v60 = vpop.permute.xlu1 %2214  ;;  %v2142_v61 = vsel %vm239_vm5, %v4108_v58, 0.0 }
0x10b6   :  { %v2220_v62 = vsel %vm243_vm4, %v2215_v60, 0  ;;  %2143 = vadd.xlane.f32.xlu1 %v2142_v61  ;;  %v2145_v11 = vsel %vm239_vm5, %v4110_v59, 0.0 }
0x10b7   :  { %2146 = vadd.xlane.f32.xlu0 %v2145_v11  ;;  %3834 = vmatpush3.bf16.msra.mxu0 %v2220_v62 }
0x10b8   :  { %3845 = vmatprep.subr.bf16.mxu0 %v4171_v2 }
0x10b9   :  { %v2313_v9 = vpop.permute.xlu1 %2312 }
0x10ba   :  { %v2318_v23 = vsel %vm243_vm4, %v2313_v9, 0 }
0x10cd   :  { %2497 = vrot.lane.b32.xlu0 %v4656_v0, %s4178_s21  ;;  %s4912_s21 = smov 8  }
0x10de   :  { %v2126_v1 = vpop.xlane.xlu0 %2125 }
0x10df   :  { %v2132_v3 = vsub.f32 %v2028_v32, %v2126_v1 }
0x10e1   :  { %v2138_v4 = vmul.f32 1.442695, %v2132_v3 }
0x10e2   :  { %v2129_v5 = vpop.xlane.xlu0 %2128 }
0x10e3   :  { %4111 = vpow2.f32 %v2138_v4  ;;  %v2133_v6 = vsub.f32 %v2112_v33, %v2129_v5 }
0x10e5   :  { %v2140_v31 = vmul.f32 1.442695, %v2133_v6 }
0x10e6   :  { %v2264_v10 = vpop.permute.xlu0 %2263 }
0x10e7   :  { %4113 = vpow2.f32 %v2140_v31  ;;  %v2269_v21 = vsel %vm243_vm4, %v2264_v10, 0 }
0x10ed   :  { %v4112_v25 = vpop.eup %4111 }
0x10ee   :  { %v2148_v7 = vsel %vm239_vm5, %v4112_v25, 0.0 }
0x10ef   :  { %2149 = vadd.xlane.f32.xlu1 %v2148_v7 }
0x10f1   :  { %v4114_v8 = vpop.eup %4113 }
0x10f2   :  { %v2151_v30 = vsel %vm239_vm5, %v4114_v8, 0.0 }
0x10f3   :  { %2152 = vadd.xlane.f32.xlu0 %v2151_v30 }
0x1100   :  { %2581 = vrot.lane.b32.xlu1 %v4656_v0, %s4177_s0 }
0x1109   :  { %2665 = vrot.lane.b32.xlu0 %v4656_v0, %s4907_s5 }
0x1127   :  { %4023 = vxpose.xlu0.b32.start.end [1/1] (short) (narrow) %v4022_v54, 8 }
0x1129   :  { %4016 = vxpose.xlu1.b32.start.end [1/1] (short) (narrow) %v4015_v51, 8 }
0x1143   :  { %v2144_v12 = vpop.xlane.xlu1 %2143 }
0x1144   :  { %4115 = vrcp.f32 %v2144_v12  ;;  %v2147_v13 = vpop.xlane.xlu0 %2146 }
0x1145   :  { %4117 = vrcp.f32 %v2147_v13 }
0x1148   :  { %v2498_v24 = vpop.permute.xlu0 %2497 }
0x114e   :  { %v4116_v14 = vpop.eup %4115 }
0x114f   :  { %v4118_v15 = vpop.eup %4117  ;;  %v2158_v16 = vmul.f32 %v4116_v14, %v4108_v58 }
0x1150   :  { %v2159_v22 = vmul.f32 %v4118_v15, %v4110_v59 }
0x1151   :  { %v2162_v19 = vpack.c.bf16 %v2158_v16, %v2158_v16 }
0x1152   :  { %v2213_v20 = vpack.c.bf16 %v2159_v22, %v2159_v22 }
0x1153   :  { %3830 = vmatmul.mubr.msk.bf16.vlgmr.msra.gmra.mrb[52].mxu1 %vm239_vm5, %v2162_v19 }
0x1154   :  { %3836 = vmatmul.mubr.msk.bf16.vlgmr.msra.gmra.mrb[52].mxu0 %vm239_vm5, %v2213_v20  ;;  %3840 = vmatpush3.bf16.msra.mxu1 %v2269_v21 }
0x1155   :  { %3846 = vmatpush3.bf16.msra.mxu0 %v2318_v23  ;;  %3841 = vmatprep.mubr.msk.bf16.mxu1 %vm4172_vm1, %v4171_v2 }
0x1156   :  { %3847 = vmatprep.mubr.msk.bf16.mxu0 %vm4172_vm1, %v4171_v2  ;;  %3851 = vmatprep.subr.bf16.mxu1 %v4171_v2 }
0x1157   :  { %3857 = vmatprep.subr.bf16.mxu0 %v4171_v2 }
0x117c   :  { %v2150_v26 = vpop.xlane.xlu1 %2149 }
0x117d   :  { %4119 = vrcp.f32 %v2150_v26  ;;  %v2758_v26 = vpack.c.bf16 %v4597_v56, %v4597_v56 }
0x1180   :  { %v2153_v27 = vpop.xlane.xlu0 %2152  ;;  %v2582_v37 = vpop.permute.xlu1 %2581 }
0x1181   :  { %4121 = vrcp.f32 %v2153_v27 }
0x1184   :  { %v2666_v36 = vpop.permute.xlu0 %2665 }
0x1187   :  { %v4120_v28 = vpop.eup %4119 }
0x1188   :  { %v2160_v29 = vmul.f32 %v4120_v28, %v4112_v25 }
0x118a   :  { %v2262_v32 = vpack.c.bf16 %v2160_v29, %v2160_v29 }
0x118b   :  { %v4122_v33 = vpop.eup %4121 }
0x118c   :  { %v2161_v34 = vmul.f32 %v4122_v33, %v4114_v8  ;;  %3842 = vmatmul.mubr.msk.bf16.vlgmr.msra.gmra.mrb[56].mxu1 %vm239_vm5, %v2262_v32 }
0x118d   :  { %3853 = vmatprep.mubr.msk.bf16.mxu1 %vm4172_vm1, %v4171_v2 }
0x118e   :  { %v2311_v35 = vpack.c.bf16 %v2161_v34, %v2161_v34 }
0x1190   :  { %3848 = vmatmul.mubr.msk.bf16.vlgmr.msra.gmra.mrb[56].mxu0 %vm239_vm5, %v2311_v35 }
0x1191   :  { %3859 = vmatprep.mubr.msk.bf16.mxu0 %vm4172_vm1, %v4171_v2 }
0x11a7   :  { %v4024_v38 = vpop.trf.xlu0 }
0x11a8   :  { %v4028_v39 = vunpack.i.h.bf16 %v4024_v38  ;;  %v4025_v40 = vunpack.i.l.bf16 %v4024_v38 }
0x11a9   :  { %v4017_v41 = vpop.trf.xlu1 }
0x11aa   :  { %v4021_v17 = vunpack.i.h.bf16 %v4017_v41  ;;  %v4018_v18 = vunpack.i.l.bf16 %v4017_v41  ;;  %v2580_v44 = vpack.c.bf16 %v4025_v40, %v4025_v40  ;;  %v2664_v45 = vpack.c.bf16 %v4028_v39, %v4028_v39 }
0x11ac   :  { %v2413_v42 = vpack.c.bf16 %v4018_v18, %v4018_v18  ;;  %v2495_v43 = vpack.c.bf16 %v4021_v17, %v4021_v17  ;;  %v2587_v50 = vsel %vm243_vm4, %v2580_v44, 0  ;;  %v2671_v51 = vsel %vm243_vm4, %v2664_v45, 0 }
0x11ae   :  { %v2418_v46 = vsel %vm243_vm4, %v2413_v42, 0  ;;  %v2503_v47 = vsel %vm243_vm4, %v2495_v43, 0 }
0x11af   :  { %3852 = vmatpush3.bf16.msra.mxu1 %v2418_v46  ;;  %3858 = vmatpush3.bf16.msra.mxu0 %v2503_v47 }
0x11b0   :  { %3863 = vmatprep.subr.bf16.mxu1 %v4171_v2  ;;  %3869 = vmatprep.subr.bf16.mxu0 %v4171_v2 }
0x11b2   :  { %3854 = vmatmul.mubr.msk.bf16.vlgmr.msra.gmra.mrb[60].mxu1 %vm239_vm5, %v4656_v0  ;;  %3860 = vmatmul.mubr.msk.bf16.vlgmr.msra.gmra.mrb[60].mxu0 %vm239_vm5, %v2498_v24 }
0x11b3   :  { %3864 = vmatpush3.bf16.msra.mxu1 %v2587_v50  ;;  %3870 = vmatpush3.bf16.msra.mxu0 %v2671_v51 }
0x11b4   :  { %3865 = vmatprep.mubr.msk.bf16.mxu1 %vm4172_vm1, %v4171_v2  ;;  %3871 = vmatprep.mubr.msk.bf16.mxu0 %vm4172_vm1, %v4171_v2 }
0x11b5   :  { %3875 = vmatprep.subr.bf16.mxu1 %v4171_v2  ;;  %3881 = vmatprep.subr.bf16.mxu0 %v4171_v2 }
0x11ba   :  { %3866 = vmatmul.mubr.msk.bf16.vlgmr.msra.gmra.mrb[64].mxu1 %vm239_vm5, %v2582_v37  ;;  %3872 = vmatmul.mubr.msk.bf16.vlgmr.msra.gmra.mrb[64].mxu0 %vm239_vm5, %v2666_v36 }
0x11bb   :  { %3877 = vmatprep.mubr.msk.bf16.mxu1 %vm4172_vm1, %v4171_v2  ;;  %3883 = vmatprep.mubr.msk.bf16.mxu0 %vm4172_vm1, %v4171_v2 }
0x1226   :  { %v4703_v52 = vpop.f32.mrb[52].mxu1 }
0x1227   :  { %v4705_v53 = vpop.f32.mrb[52].mxu0  ;;  %v3831_v54 = vpop.f32.mrb[53].mxu1 }
0x1228   :  { %v3837_v55 = vpop.f32.mrb[53].mxu0  ;;  %v2210_v57 = vpop.f32.mrb[54].mxu1 }
0x1229   :  { %v2259_v58 = vpop.f32.mrb[54].mxu0  ;;  %v3832_v59 = vpop.f32.mrb[55].mxu1 }
0x122a   :  { %v3838_v60 = vpop.f32.mrb[55].mxu0 }
0x125f   :  { %v4707_v61 = vpop.f32.mrb[56].mxu1 }
0x1260   :  { %v3843_v62 = vpop.f32.mrb[57].mxu1 }
0x1261   :  { %v2308_v11 = vpop.f32.mrb[58].mxu1 }
0x1262   :  { %v3844_v63 = vpop.f32.mrb[59].mxu1 }
0x1263   :  { %v4709_v0 = vpop.f32.mrb[56].mxu0 }
0x1264   :  { %v3849_v1 = vpop.f32.mrb[57].mxu0 }
0x1265   :  { %v2357_v3 = vpop.f32.mrb[58].mxu0 }
0x1266   :  { %v3850_v4 = vpop.f32.mrb[59].mxu0 }
0x1285   :  { %v2454_v5 = vpop.f32.mrb[60].mxu1  ;;  %v2539_v6 = vpop.f32.mrb[60].mxu0 }
0x1286   :  { %v3855_v31 = vpop.f32.mrb[61].mxu1  ;;  %v3861_v25 = vpop.f32.mrb[61].mxu0  ;;  %v2713_v7 = vsel %vm239_vm5, %v2454_v5, -inf  ;;  %v2716_v8 = vsel %vm239_vm5, %v2539_v6, -inf }
0x1287   :  { %2714 = vmax.xlane.f32.xlu0 %v2713_v7  ;;  %v2457_v30 = vpop.f32.mrb[62].mxu1  ;;  %2717 = vmax.xlane.f32.xlu1 %v2716_v8  ;;  %v2542_v9 = vpop.f32.mrb[62].mxu0 }
0x1288   :  { %v3856_v10 = vpop.f32.mrb[63].mxu1  ;;  %v3862_v12 = vpop.f32.mrb[63].mxu0 }
0x1289   :  { %v4056_v10 = vld [vmem:[%s4866_s6 + $0x10] sm:$0xff]  }
0x128d   :  { %v2623_v13 = vpop.f32.mrb[64].mxu1  ;;  %v2707_v14 = vpop.f32.mrb[64].mxu0 }
0x128e   :  { %v3867_v15 = vpop.f32.mrb[65].mxu1  ;;  %v3873_v16 = vpop.f32.mrb[65].mxu0  ;;  %v2719_v22 = vsel %vm239_vm5, %v2623_v13, -inf  ;;  %v2722_v19 = vsel %vm239_vm5, %v2707_v14, -inf }
0x128f   :  { %2720 = vmax.xlane.f32.xlu0 %v2719_v22  ;;  %v2626_v20 = vpop.f32.mrb[66].mxu1  ;;  %2723 = vmax.xlane.f32.xlu1 %v2722_v19  ;;  %v2710_v21 = vpop.f32.mrb[66].mxu0  ;;  %v4057_v15 = vld [vmem:[%s4866_s6 + $0x18] sm:$0xff]   ;;  %s4913_s6 = smov 16  }
0x1290   :  { %v3868_v23 = vpop.f32.mrb[67].mxu1  ;;  %v3874_v24 = vpop.f32.mrb[67].mxu0 }
0x12a0   :  { %2809 = vrot.lane.b32.xlu1 %v2758_v26, %s4909_s3 }
0x12a5   :  { %2760 = vrot.lane.b32.xlu0 %v2758_v26, %s4908_s23 }
0x1314   :  { %v2715_v27 = vpop.xlane.xlu0 %2714  ;;  %v2718_v28 = vpop.xlane.xlu1 %2717 }
0x1315   :  { %v2725_v29 = vsub.f32 %v2454_v5, %v2715_v27  ;;  %v2726_v32 = vsub.f32 %v2539_v6, %v2718_v28 }
0x1317   :  { %v2729_v33 = vmul.f32 1.442695, %v2725_v29  ;;  %v2731_v34 = vmul.f32 1.442695, %v2726_v32 }
0x1319   :  { %4123 = vpow2.f32 %v2729_v33 }
0x131a   :  { %4125 = vpow2.f32 %v2731_v34 }
0x131c   :  { %v2721_v35 = vpop.xlane.xlu0 %2720  ;;  %v2724_v36 = vpop.xlane.xlu1 %2723 }
0x131d   :  { %v2727_v37 = vsub.f32 %v2623_v13, %v2721_v35  ;;  %v2728_v38 = vsub.f32 %v2707_v14, %v2724_v36 }
0x131f   :  { %v2733_v39 = vmul.f32 1.442695, %v2727_v37  ;;  %v2735_v40 = vmul.f32 1.442695, %v2728_v38 }
0x1320   :  { %v2761_v41 = vpop.permute.xlu0 %2760  ;;  %v2810_v56 = vpop.permute.xlu1 %2809 }
0x1321   :  { %4127 = vpow2.f32 %v2733_v39  ;;  %v2766_v17 = vsel %vm243_vm4, %v2761_v41, 0  ;;  %v2815_v18 = vsel %vm243_vm4, %v2810_v56, 0 }
0x1322   :  { %4129 = vpow2.f32 %v2735_v40  ;;  %3876 = vmatpush3.bf16.msra.mxu1 %v2766_v17  ;;  %3882 = vmatpush3.bf16.msra.mxu0 %v2815_v18 }
0x1323   :  { %v4124_v42 = vpop.eup %4123  ;;  %3887 = vmatprep.subr.bf16.mxu1 %v4171_v2  ;;  %3893 = vmatprep.subr.bf16.mxu0 %v4171_v2 }
0x1324   :  { %v4126_v43 = vpop.eup %4125  ;;  %v2737_v44 = vsel %vm239_vm5, %v4124_v42, 0.0 }
0x1325   :  { %2738 = vadd.xlane.f32.xlu0 %v2737_v44  ;;  %v2740_v45 = vsel %vm239_vm5, %v4126_v43, 0.0 }
0x1326   :  { %2741 = vadd.xlane.f32.xlu1 %v2740_v45 }
0x132b   :  { %v4128_v46 = vpop.eup %4127 }
0x132c   :  { %v4130_v47 = vpop.eup %4129  ;;  %v2743_v50 = vsel %vm239_vm5, %v4128_v46, 0.0 }
0x132d   :  { %2744 = vadd.xlane.f32.xlu0 %v2743_v50  ;;  %v2746_v51 = vsel %vm239_vm5, %v4130_v47, 0.0 }
0x132e   :  { %2747 = vadd.xlane.f32.xlu1 %v2746_v51 }
0x133f   :  { %2858 = vrot.lane.b32.xlu1 %v2758_v26, %s4911_s27 }
0x1343   :  { %2907 = vrot.lane.b32.xlu0 %v2758_v26, %s4910_s26  ;;  %s4187_s26 = smov [#allocation2]  }
0x13b2   :  { %v2739_v54 = vpop.xlane.xlu0 %2738 }
0x13b3   :  { %4131 = vrcp.f32 %v2739_v54  ;;  %v2742_v55 = vpop.xlane.xlu1 %2741 }
0x13b4   :  { %4133 = vrcp.f32 %v2742_v55 }
0x13ba   :  { %v2745_v57 = vpop.xlane.xlu0 %2744 }
0x13bb   :  { %4135 = vrcp.f32 %v2745_v57  ;;  %v2748_v58 = vpop.xlane.xlu1 %2747 }
0x13bc   :  { %4137 = vrcp.f32 %v2748_v58 }
0x13bd   :  { %v4132_v59 = vpop.eup %4131 }
0x13be   :  { %v4134_v60 = vpop.eup %4133  ;;  %v2753_v62 = vmul.f32 %v4132_v59, %v4124_v42  ;;  %v2908_v1 = vpop.permute.xlu0 %2907 }
0x13bf   :  { %v2754_v11 = vmul.f32 %v4134_v60, %v4126_v43  ;;  %v2859_v63 = vpop.permute.xlu1 %2858  ;;  %v2913_v6 = vsel %vm243_vm4, %v2908_v1, 0 }
0x13c0   :  { %v2757_v3 = vpack.c.bf16 %v2753_v62, %v2753_v62  ;;  %v2864_v5 = vsel %vm243_vm4, %v2859_v63, 0 }
0x13c1   :  { %v2808_v4 = vpack.c.bf16 %v2754_v11, %v2754_v11 }
0x13c2   :  { %3878 = vmatmul.mubr.msk.bf16.vlgmr.msra.gmra.mrb[68].mxu1 %vm239_vm5, %v2757_v3 }
0x13c3   :  { %3884 = vmatmul.mubr.msk.bf16.vlgmr.msra.gmra.mrb[68].mxu0 %vm239_vm5, %v2808_v4  ;;  %3888 = vmatpush3.bf16.msra.mxu1 %v2864_v5 }
0x13c4   :  { %3894 = vmatpush3.bf16.msra.mxu0 %v2913_v6  ;;  %3889 = vmatprep.mubr.msk.bf16.mxu1 %vm4172_vm1, %v4171_v2 }
0x13c5   :  { %v4136_v31 = vpop.eup %4135  ;;  %3895 = vmatprep.mubr.msk.bf16.mxu0 %vm4172_vm1, %v4171_v2  ;;  %3899 = vmatprep.subr.bf16.mxu1 %v4171_v2 }
0x13c6   :  { %v4138_v25 = vpop.eup %4137  ;;  %v2755_v7 = vmul.f32 %v4136_v31, %v4128_v46  ;;  %3907 = vmatprep.subr.bf16.mxu0 %v4171_v2 }
0x13c7   :  { %v2756_v8 = vmul.f32 %v4138_v25, %v4130_v47 }
0x13c8   :  { %v2857_v30 = vpack.c.bf16 %v2755_v7, %v2755_v7  ;;  %v4059_v7 = vld [vmem:[%s4868_s8 + $0x18] sm:$0xff]  }
0x13c9   :  { %v2906_v9 = vpack.c.bf16 %v2756_v8, %v2756_v8  ;;  %v4060_v8 = vld [vmem:[%s4870_s10 + $0x20] sm:$0xff]  }
0x13ca   :  { %3890 = vmatmul.mubr.msk.bf16.vlgmr.msra.gmra.mrb[72].mxu1 %vm239_vm5, %v2857_v30  ;;  %v4061_v30 = vld [vmem:[%s4870_s10 + $0x28] sm:$0xff]  }
0x13cb   :  { %3896 = vmatmul.mubr.msk.bf16.vlgmr.msra.gmra.mrb[72].mxu0 %vm239_vm5, %v2906_v9  ;;  %3903 = vmatprep.mubr.msk.bf16.mxu1 %vm4172_vm1, %v4171_v2 }
0x13cc   :  { %3911 = vmatprep.mubr.msk.bf16.mxu0 %vm4172_vm1, %v4171_v2  ;;  %3900 = vmatpush3.bf16.msra.mxu1 %v4056_v10 }
0x13cd   :  { %3901 = vmatprep.subr.bf16.mxu1 %v4171_v2 }
0x13d0   :  { %3902 = vmatpush3.bf16.msra.mxu1 %v4057_v15 }
0x13d1   :  { %3915 = vmatprep.subr.bf16.mxu1 %v4171_v2 }
0x1495   :  { %v2802_v12 = vpop.f32.mrb[68].mxu1 }
0x1496   :  { %v2851_v13 = vpop.f32.mrb[68].mxu0  ;;  %v3879_v14 = vpop.f32.mrb[69].mxu1 }
0x1497   :  { %v4029_v16 = vpack.i.bf16 %v2851_v13, %v4705_v53  ;;  %v3885_v22 = vpop.f32.mrb[69].mxu0  ;;  %v2805_v19 = vpop.f32.mrb[70].mxu1 }
0x1498   :  { %v2854_v20 = vpop.f32.mrb[70].mxu0  ;;  %v3880_v21 = vpop.f32.mrb[71].mxu1  ;;  %v3521_v19 = vld [vmem:[%s4872_s12 + $0x1] ss:$0 sm:$0xff] }
0x1499   :  { %4030 = vrot.lane.b32.xlu1 %v4029_v16, %s4912_s21  ;;  %v3886_v23 = vpop.f32.mrb[71].mxu0 }
0x149d   :  { %v2900_v24 = vpop.f32.mrb[72].mxu1 }
0x149e   :  { %v4034_v26 = vpack.i.bf16 %v2900_v24, %v4707_v61  ;;  %v2949_v27 = vpop.f32.mrb[72].mxu0  ;;  %v3891_v28 = vpop.f32.mrb[73].mxu1  ;;  %v3522_v24 = vld [vmem:[%s4873_s13 + $0x1] ss:$0 sm:$0xff] }
0x149f   :  { %v4039_v29 = vpack.i.bf16 %v2949_v27, %v4709_v0  ;;  %v3897_v32 = vpop.f32.mrb[73].mxu0  ;;  %v2903_v33 = vpop.f32.mrb[74].mxu1 }
0x14a0   :  { %v2952_v53 = vpop.f32.mrb[74].mxu0  ;;  %4035 = vrot.lane.b32.xlu0 %v4034_v26, %s4913_s6  ;;  %v3892_v34 = vpop.f32.mrb[75].mxu1  ;;  %v4062_v32 = vld [vmem:[%s4870_s10 + $0x30] sm:$0xff]   ;;  %v4063_v33 = vld [vmem:[%s4870_s10 + $0x38] sm:$0xff]  }
0x14a1   :  { %4040 = vrot.lane.b32.xlu1 %v4039_v29, %s4914_s24  ;;  %v3898_v35 = vpop.f32.mrb[75].mxu0  ;;  %v3528_v53 = vld [vmem:[%s4869_s9 + $0x1] ss:$0 sm:$0xff] }
0x150b   :  { %v4031_v36 = vpop.permute.xlu1 %4030 }
0x150c   :  { %v4033_v37 = vunpack.i.h.bf16 %v4031_v36  ;;  %v4032_v38 = vunpack.i.l.bf16 %v4031_v36 }
0x150e   :  { %v2967_v56 = vsel %vm239_vm5, %v2802_v12, %v4033_v37  ;;  %v2372_v0 = vsel %vm239_vm5, %v4703_v52, %v4032_v38  ;;  %v3515_v52 = vld [vmem:[%s4867_s7 + $0x1] ss:$0 sm:$0xff] }
0x1512   :  { %v4036_v39 = vpop.permute.xlu0 %4035 }
0x1513   :  { %v4038_v40 = vunpack.i.h.bf16 %v4036_v39  ;;  %v4037_v41 = vunpack.i.l.bf16 %v4036_v39  ;;  %v4041_v61 = vpop.permute.xlu1 %4040 }
0x1514   :  { %v4043_v17 = vunpack.i.h.bf16 %v4041_v61  ;;  %v4042_v18 = vunpack.i.l.bf16 %v4041_v61 }
0x1515   :  { %v2373_v42 = vsel %vm795_vm6, %v2372_v0, %v4037_v41  ;;  %v2968_v43 = vsel %vm795_vm6, %v2967_v56, %v4038_v40  ;;  %v3541_v56 = vld [vmem:[%s4871_s11 + $0x1] ss:$0 sm:$0xff] }
0x1516   :  { %v2969_v44 = vsel %vm797_vm7, %v2968_v43, %v4043_v17  ;;  %v2374_v45 = vsel %vm797_vm7, %v2373_v42, %v4042_v18 }
0x1517   :  { %v2975_v46 = vpack.c.bf16 %v2969_v44, %v2374_v45 }
0x1519   :  { %3904 = vmatmul.mubr.msk.bf16.vlgmr.msra.gmra.mrb[76].mxu1 %vm155_vm3, %v2975_v46 }
0x151a   :  { %3923 = vmatprep.mubr.msk.bf16.mxu1 %vm4172_vm1, %v4171_v2  ;;  %3916 = vmatpush3.bf16.msra.mxu1 %v4060_v8 }
0x151b   :  { %3917 = vmatprep.subr.bf16.mxu1 %v4171_v2 }
0x151e   :  { %3918 = vmatpush3.bf16.msra.mxu1 %v4061_v30  ;;  %v3550_v30 = vld [vmem:[%s4875_s15 + $0x1] ss:$0 sm:$0xff] }
0x151f   :  { %3919 = vmatprep.subr.bf16.mxu1 %v4171_v2 }
0x1522   :  { %3920 = vmatpush3.bf16.msra.mxu1 %v4062_v32 }
0x1523   :  { %3921 = vmatprep.subr.bf16.mxu1 %v4171_v2 }
0x1526   :  { %3922 = vmatpush3.bf16.msra.mxu1 %v4063_v33 }
0x15ec   :  { %v3033_v47 = vpop.f32.mrb[76].mxu1 }
0x15ed   :  { %v3034_v50 = vadd.f32 %v3515_v52, %v3033_v47  ;;  %v3905_v51 = vpop.f32.mrb[77].mxu1 }
0x15ee   :  { %v3036_v54 = vpop.f32.mrb[78].mxu1 }
0x15ef   :  { %v3040_v55 = vadd.f32 %v3034_v50, %v4583_v48  ;;  %v3037_v57 = vadd.f32 %v3515_v52, %v3036_v54  ;;  %v3906_v58 = vpop.f32.mrb[79].mxu1 }
0x15f1   :  { %v3041_v59 = vadd.f32 %v3037_v57, %v4585_v49  ;;  %v3046_v60 = vsel %vm155_vm3, %v3040_v55, 0.0  ;;  %v4058_v49 = vld [vmem:[%s4868_s8 + $0x10] sm:$0xff]  }
0x15f2   :  { %3047 = vadd.xlane.f32.xlu0 %v3046_v60  ;;  %3908 = vmatpush3.bf16.msra.mxu0 %v4058_v49  ;;  %v3549_v49 = vld [vmem:[%s4874_s14 + $0x1] ss:$0 sm:$0xff] }
0x15f3   :  { %v3049_v62 = vsel %vm155_vm3, %v3041_v59, 0.0  ;;  %3909 = vmatprep.subr.bf16.mxu0 %v4171_v2 }
0x15f4   :  { %3050 = vadd.xlane.f32.xlu1 %v3049_v62 }
0x15f6   :  { %3910 = vmatpush3.bf16.msra.mxu0 %v4059_v7 }
0x15f7   :  { %3927 = vmatprep.subr.bf16.mxu0 %v4171_v2 }
0x167f   :  { %v3048_v11 = vpop.xlane.xlu0 %3047 }
0x1680   :  { %v3052_v63 = vmul.f32 0.03125, %v3048_v11 }
0x1681   :  { %v3051_v1 = vpop.xlane.xlu1 %3050 }
0x1682   :  { %v3054_v3 = vsub.f32 %v3040_v55, %v3052_v63  ;;  %v3053_v4 = vmul.f32 0.03125, %v3051_v1  ;;  %v4064_v63 = vld [vmem:[%s4876_s16] sm:$0xff]   ;;  %v4065_v1 = vld [vmem:[%s4876_s16 + $0x8] sm:$0xff]  }
0x1684   :  { %v3055_v5 = vsub.f32 %v3041_v59, %v3053_v4  ;;  %v3056_v6 = vmul.f32 %v3054_v3, %v3054_v3 }
0x1686   :  { %v3058_v31 = vsel %vm155_vm3, %v3056_v6, 0.0  ;;  %v3057_v48 = vmul.f32 %v3055_v5, %v3055_v5 }
0x1687   :  { %3059 = vadd.xlane.f32.xlu0 %v3058_v31 }
0x1688   :  { %v3061_v25 = vsel %vm155_vm3, %v3057_v48, 0.0 }
0x168b   :  { %3062 = vadd.xlane.f32.xlu0 %v3061_v25 }
0x1714   :  { %v3060_v9 = vpop.xlane.xlu0 %3059 }
0x1715   :  { %v3064_v10 = vmul.f32 0.03125, %v3060_v9 }
0x1717   :  { %v3066_v12 = vadd.f32 1e-05, %v3064_v10 }
0x1718   :  { %v3063_v13 = vpop.xlane.xlu0 %3062 }
0x1719   :  { %4139 = vrsqrt.f32 %v3066_v12  ;;  %v3065_v14 = vmul.f32 0.03125, %v3063_v13 }
0x171b   :  { %v3067_v15 = vadd.f32 1e-05, %v3065_v14 }
0x171d   :  { %4141 = vrsqrt.f32 %v3067_v15 }
0x1723   :  { %v4140_v16 = vpop.eup %4139 }
0x1724   :  { %v3070_v22 = vmul.f32 %v4140_v16, %v3054_v3 }
0x1726   :  { %v3078_v21 = vmul.f32 %v3521_v19, %v3070_v22 }
0x1727   :  { %v4142_v20 = vpop.eup %4141 }
0x1728   :  { %v3071_v23 = vmul.f32 %v4142_v20, %v3055_v5  ;;  %v3086_v27 = vadd.f32 %v3522_v24, %v3078_v21  ;;  %v4066_v20 = vld [vmem:[%s4878_s18] sm:$0xff]   ;;  %s3437_s18 = sshll.u32 %s4187_s26, 4  ;;  %s3438_s18 = int_to_ptr.vmem [resolvable:$true] %s3437_s18 }
0x1729   :  { %v3551_v21 = vld [vmem:[%s4877_s17] ss:$0 sm:$0xff]  ;;  %s4147_s17 = scalar_lea.vmem %s3438_s18, 32  ;;  %p4152_p1 = scmp.lt.s32.totalorder %s3438_s18, %s3438_s18 }
0x172a   :  { %v3079_v26 = vmul.f32 %v3521_v19, %v3071_v23  ;;  %p4148_p0 = scmp.ne.s32.totalorder %s3438_s18, %s4147_s17  ;;  %p4153_p2 = scmp.lt.s32.totalorder %s4147_s17, %s4147_s17 }
0x172c   :  { %v3087_v28 = vadd.f32 %v3522_v24, %v3079_v26  ;;  %p4154_p3 = por %p4153_p2, %p4152_p1 }
0x172e   :  { %v3093_v29 = vpack.c.bf16 %v3087_v28, %v3086_v27  ;;  %p4155_p4 = pnand %p4154_p3, %p4148_p0 }
0x1730   :  { %3912 = vmatmul.mubr.msk.bf16.vlgmr.msra.gmra.mrb[76].mxu0 %vm155_vm3, %v3093_v29 }
0x1731   :  { %3931 = vmatprep.mubr.msk.bf16.mxu0 %vm4172_vm1, %v4171_v2  ;;  %3928 = vmatpush3.bf16.msra.mxu0 %v4064_v63 }
0x1732   :  { %3929 = vmatprep.subr.bf16.mxu0 %v4171_v2 }
0x1735   :  { %3930 = vmatpush3.bf16.msra.mxu0 %v4065_v1 }
0x1736   :  { %3935 = vmatprep.subr.bf16.mxu0 %v4171_v2 }
0x1803   :  { %v3151_v34 = vpop.f32.mrb[76].mxu0 }
0x1804   :  { %v3152_v35 = vadd.f32 %v3528_v53, %v3151_v34  ;;  %v3913_v36 = vpop.f32.mrb[77].mxu0 }
0x1805   :  { %v3154_v37 = vpop.f32.mrb[78].mxu0 }
0x1806   :  { %v3155_v38 = vadd.f32 %v3528_v53, %v3154_v37  ;;  %v3914_v39 = vpop.f32.mrb[79].mxu0  ;;  %v3158_v40 = vmax.f32 %v3152_v35, 0.0 }
0x1808   :  { %v3159_v41 = vmax.f32 %v3155_v38, 0.0 }
0x180a   :  { %v3169_v61 = vpack.c.bf16 %v3159_v41, %v3158_v40 }
0x180c   :  { %3924 = vmatmul.mubr.msk.bf16.vlgmr.msra.gmra.mrb[80].mxu1 %vm1619_vm8, %v3169_v61 }
0x18df   :  { %v3239_v0 = vpop.f32.mrb[80].mxu1 }
0x18e0   :  { %v3240_v17 = vadd.f32 %v3541_v56, %v3239_v0  ;;  %v3925_v18 = vpop.f32.mrb[81].mxu1 }
0x18e1   :  { %v3242_v42 = vpop.f32.mrb[82].mxu1 }
0x18e2   :  { %v3246_v43 = vadd.f32 %v3240_v17, %v3086_v27  ;;  %v3243_v44 = vadd.f32 %v3541_v56, %v3242_v42  ;;  %v3926_v45 = vpop.f32.mrb[83].mxu1 }
0x18e4   :  { %v3247_v46 = vadd.f32 %v3243_v44, %v3087_v28  ;;  %v3252_v52 = vsel %vm155_vm3, %v3246_v43, 0.0 }
0x18e5   :  { %3253 = vadd.xlane.f32.xlu1 %v3252_v52 }
0x18e6   :  { %v3255_v47 = vsel %vm155_vm3, %v3247_v46, 0.0 }
0x18e7   :  { %3256 = vadd.xlane.f32.xlu0 %v3255_v47 }
0x1972   :  { %v3254_v50 = vpop.xlane.xlu1 %3253 }
0x1973   :  { %v3258_v51 = vmul.f32 0.03125, %v3254_v50 }
0x1974   :  { %v3257_v54 = vpop.xlane.xlu0 %3256 }
0x1975   :  { %v3260_v55 = vsub.f32 %v3246_v43, %v3258_v51  ;;  %v3259_v57 = vmul.f32 0.03125, %v3257_v54 }
0x1977   :  { %v3261_v58 = vsub.f32 %v3247_v46, %v3259_v57  ;;  %v3262_v59 = vmul.f32 %v3260_v55, %v3260_v55 }
0x1979   :  { %v3264_v60 = vsel %vm155_vm3, %v3262_v59, 0.0  ;;  %v3263_v62 = vmul.f32 %v3261_v58, %v3261_v58 }
0x197a   :  { %3265 = vadd.xlane.f32.xlu1 %v3264_v60 }
0x197b   :  { %v3267_v11 = vsel %vm155_vm3, %v3263_v62, 0.0 }
0x197c   :  { %3268 = vadd.xlane.f32.xlu0 %v3267_v11 }
0x1a07   :  { %v3266_v3 = vpop.xlane.xlu1 %3265 }
0x1a08   :  { %v3270_v4 = vmul.f32 0.03125, %v3266_v3 }
0x1a09   :  { %v3269_v5 = vpop.xlane.xlu0 %3268 }
0x1a0a   :  { %v3272_v6 = vadd.f32 1e-05, %v3270_v4  ;;  %v3271_v31 = vmul.f32 0.03125, %v3269_v5 }
0x1a0c   :  { %4143 = vrsqrt.f32 %v3272_v6  ;;  %v3273_v48 = vadd.f32 1e-05, %v3271_v31 }
0x1a0e   :  { %4145 = vrsqrt.f32 %v3273_v48 }
0x1a16   :  { %v4144_v25 = vpop.eup %4143 }
0x1a17   :  { %v3276_v7 = vmul.f32 %v4144_v25, %v3260_v55 }
0x1a18   :  { %v4146_v8 = vpop.eup %4145 }
0x1a19   :  { %v3284_v9 = vmul.f32 %v3549_v49, %v3276_v7  ;;  %v3277_v10 = vmul.f32 %v4146_v8, %v3261_v58 }
0x1a1b   :  { %v3292_v12 = vadd.f32 %v3550_v30, %v3284_v9  ;;  %v3285_v13 = vmul.f32 %v3549_v49, %v3277_v10 }
0x1a1d   :  { %v3293_v14 = vadd.f32 %v3550_v30, %v3285_v13  ;;  %v3295_v15 = vrot.slane %v3292_v12, 7 }
0x1a1f   :  { %v3298_v16 = vrot.slane %v3293_v14, 6 }
0x1a21   :  { %v3301_v22 = vsel %vm3300_vm9, %v3295_v15, %v3298_v16 }
0x1a22   :  { %v3306_v19 = vpack.c.bf16 %v3301_v22, %v3301_v22 }
0x1a24   :  { %3932 = vmatmul.mubr.msk.bf16.vlgmr.msra.gmra.mrb[80].mxu0 %vm155_vm3, %v3306_v19 }
0x1a25   :  { %3937 = vmatprep.mubr.msk.bf16.mxu0 %vm4172_vm1, %v4171_v2  ;;  %3936 = vmatpush3.bf16.msra.mxu0 %v4066_v20  ;;  %v3555_v2 = vld [vmem:[%s4879_s19] ss:$0 sm:$0xff] }
0x1af7   :  { %v3363_v23 = vpop.f32.mrb[80].mxu0 }
0x1af8   :  { %v3364_v24 = vadd.f32 %v3551_v21, %v3363_v23  ;;  %v3933_v26 = vpop.f32.mrb[81].mxu0 }
0x1af9   :  { %v3366_v27 = vpop.f32.mrb[82].mxu0 }
0x1afa   :  { %v3369_v28 = vmax.f32 %v3364_v24, 0.0  ;;  %v3934_v29 = vpop.f32.mrb[83].mxu0 }
0x1afc   :  { %v3372_v32 = vpack.c.bf16 %v3369_v28, %v3369_v28 }
0x1afe   :  { %3938 = vmatmul.mubr.msk.bf16.vlgmr.msra.gmra.mrb[84].mxu0 %vm795_vm6, %v3372_v32 }
0x1bd1   :  { %v3423_v33 = vpop.f32.mrb[84].mxu0 }
0x1bd2   :  { %v3424_v53 = vadd.f32 %v3555_v2, %v3423_v33  ;;  %v3939_v34 = vpop.f32.mrb[85].mxu0 }
0x1bd3   :  { %v3426_v35 = vpop.f32.mrb[86].mxu0 }
0x1bd4   :  { %v3940_v36 = vpop.f32.mrb[87].mxu0  ;;  %3430 = vst.msk [vmem:[#allocation2] sm:$0x3] %vm3429_vm10, %v3424_v53 }
0x1bd5   :  { %4158 = shalt.err (!%p4155_p4)
}
0x1bd6   :  { %s4159_s19 = scalar_lea.hbm %s4880_s20, 32 }
0x1bd7   :  { %p4160_p5 = scmp.ne.s32.totalorder %s4880_s20, %s4159_s19  ;;  %p4163_p6 = scmp.lt.u32.totalorder %s4159_s19, %s4880_s20 }
0x1bd9   :  { %p4165_p7 = pnand %p4163_p6, %p4160_p5 }
0x1bdb   :  { %4168 = shalt.err (!%p4165_p7)
}
0x1bdc   :  { %3440 = dma.vmem_to_hbm [thread:$0]  %s3438_s18, 32, %s4880_s20, [#allocation3]  }
0x1bdd   :  { %4169 = dma.done.wait [#allocation3], 32  }
0x1bde   :  { %4170 = vsyncadd [#allocation3], 4294967264 }
0x1bdf   :  { %3444 = vsyncpa [#allocation3], 1 }

</bundles_post_ra>
